<compile_context>
chip_gen: v6e
topology: v6e:2x2x1
jax: 0.10.0
libtpu: 0.0.40
codegen_flags: <defaults>
</compile_context>

<pallas_src>
import math
import numpy as np
import jax
import jax.numpy as jnp
from jax.experimental import pallas as pl
from jax.experimental.pallas import tpu as pltpu

# ----- hyperparameters consistent with NeuralLanguageModel.__init__ -----
NTOKEN   = 27            # vocab size (ntoken == vocab_size)
D_MODEL  = 32
NHEAD    = 2
D_HID    = 64
NLAYERS  = 2
HEAD_DIM = D_MODEL // NHEAD
SEQ      = 8             # power of two (needed for the cheap batch-id shift)
BATCH    = 2
BS       = BATCH * SEQ   # rows processed per kernel invocation
LN_EPS   = 1e-5
NEG_INF  = -1e30
V_PAD    = 128           # lane-dense padded vocab width
EMB_ROWS = 32            # padded embedding table rows (>= NTOKEN)

assert SEQ & (SEQ - 1) == 0, "SEQ must be a power of two"


def _layer_norm(x, w, b):
    # x: (BS, D), w/b: (1, D)
    mu = jnp.mean(x, axis=-1, keepdims=True)
    var = jnp.mean((x - mu) ** 2, axis=-1, keepdims=True)
    return (x - mu) * jax.lax.rsqrt(var + LN_EPS) * w + b


def transformer_lm_kernel(ids_ref, emb_ref, pe_ref,
                          wq_ref, bq_ref, wk_ref, bk_ref, wv_ref, bv_ref,
                          wo_ref, bo_ref, ln1w_ref, ln1b_ref,
                          w1_ref, b1_ref, w2_ref, b2_ref,
                          ln2w_ref, ln2b_ref,
                          wout_ref, bout_ref,
                          o_ref):
    """Post-norm TransformerEncoder (nn.TransformerEncoderLayer defaults:
    norm_first=False, relu FFN, dropout disabled == eval()) + final Linear,
    with embedding/PE prologue fused in.  sqrt(d_model) is pre-folded into
    emb_ref and 1/sqrt(head_dim) into wq/bq."""
    # ---- fused embedding lookup (gather-free one-hot matmul) + PE ----
    ids = ids_ref[...]                                             # (BS, 1) int32
    vocab_iota = jax.lax.broadcasted_iota(jnp.int32, (BS, EMB_ROWS), 1)
    onehot = (vocab_iota == ids).astype(jnp.float32)               # (BS, EMB_ROWS)
    x = jnp.dot(onehot, emb_ref[...], preferred_element_type=jnp.float32)
    x = x + pe_ref[...]                                            # (BS, D)

    # ---- block-diagonal (same batch) causal mask over flattened rows ----
    n_row = jax.lax.broadcasted_iota(jnp.int32, (BS, BS), 0)
    n_col = jax.lax.broadcasted_iota(jnp.int32, (BS, BS), 1)
    shift = SEQ.bit_length() - 1                                   # SEQ == 2**shift
    same_batch = jnp.right_shift(n_row, shift) == jnp.right_shift(n_col, shift)
    allowed = jnp.logical_and(same_batch, n_col <= n_row)          # (BS, BS) bool

    for l in range(NLAYERS):
        # ---- multi-head self attention (per-head weights, no slicing/concat) ----
        attn = None
        for h in range(NHEAD):
            idx = l * NHEAD + h
            # wq/bq already carry the 1/sqrt(head_dim) scale.
            qh = jnp.dot(x, wq_ref[idx], preferred_element_type=jnp.float32) + bq_ref[idx]
            kh = jnp.dot(x, wk_ref[idx], preferred_element_type=jnp.float32) + bk_ref[idx]
            vh = jnp.dot(x, wv_ref[idx], preferred_element_type=jnp.float32) + bv_ref[idx]

            s = jnp.einsum('qk,mk->qm', qh, kh,
                           preferred_element_type=jnp.float32)     # (BS, BS)
            s = jnp.where(allowed, s, NEG_INF)
            s = s - jnp.max(s, axis=-1, keepdims=True)
            p = jnp.exp(s)
            p = p * pl.reciprocal(jnp.sum(p, axis=-1, keepdims=True), approx=True)

            oh = jnp.dot(p, vh, preferred_element_type=jnp.float32)            # (BS, K)
            hp = jnp.dot(oh, wo_ref[idx], preferred_element_type=jnp.float32)  # (BS, D)
            attn = hp if attn is None else attn + hp
        attn = attn + bo_ref[l]

        x = _layer_norm(x + attn, ln1w_ref[l], ln1b_ref[l])

        # ---- feed-forward (relu) ----
        h1 = jnp.dot(x, w1_ref[l], preferred_element_type=jnp.float32) + b1_ref[l]
        h1 = jnp.maximum(h1, 0.0)
        ff = jnp.dot(h1, w2_ref[l], preferred_element_type=jnp.float32) + b2_ref[l]

        x = _layer_norm(x + ff, ln2w_ref[l], ln2b_ref[l])

    # ---- final vocabulary projection, lane-dense (BS, 128) store ----
    o_ref[...] = (jnp.dot(x, wout_ref[...], preferred_element_type=jnp.float32)
                  + bout_ref[...])


def _full_spec(shape):
    n = len(shape)
    return pl.BlockSpec(shape, lambda i, _n=n: (0,) * _n)


def pack_kernel_params(p):
    """One-time host-side packing: pre-transpose / per-head-split the PyTorch
    layout, fold sqrt(d_model) into the embedding table and 1/sqrt(head_dim)
    into Wq/bq, and pad the output projection to 128 lanes."""
    K = HEAD_DIM
    scale = 1.0 / math.sqrt(HEAD_DIM)
    wq, wk, wv, bq, bk, bv, wo = [], [], [], [], [], [], []
    for l in range(NLAYERS):
        Wqkv = p["wqkv"][l]          # (3D, D), rows = [Wq; Wk; Wv]
        bqkv = p["bqkv"][l][0]       # (3D,)
        Wo = p["wo"][l]              # (D, D)
        for h in range(NHEAD):
            sl = slice(h * K, (h + 1) * K)
            wq.append(scale * Wqkv[0 * D_MODEL:1 * D_MODEL][sl, :].T)   # (D, K)
            wk.append(Wqkv[1 * D_MODEL:2 * D_MODEL][sl, :].T)
            wv.append(Wqkv[2 * D_MODEL:3 * D_MODEL][sl, :].T)
            bq.append(scale * bqkv[0 * D_MODEL:1 * D_MODEL][sl][None, :])  # (1, K)
            bk.append(bqkv[1 * D_MODEL:2 * D_MODEL][sl][None, :])
            bv.append(bqkv[2 * D_MODEL:3 * D_MODEL][sl][None, :])
            wo.append(Wo[:, sl].T)                                      # (K, D)
    kp = {
        "wq": jnp.stack(wq), "bq": jnp.stack(bq),
        "wk": jnp.stack(wk), "bk": jnp.stack(bk),
        "wv": jnp.stack(wv), "bv": jnp.stack(bv),
        "wo": jnp.stack(wo), "bo": p["bo"],
        "ln1w": p["ln1w"], "ln1b": p["ln1b"],
        "w1": jnp.transpose(p["w1"], (0, 2, 1)),   # (L, D, D_HID)
        "b1": p["b1"],
        "w2": jnp.transpose(p["w2"], (0, 2, 1)),   # (L, D_HID, D)
        "b2": p["b2"],
        "ln2w": p["ln2w"], "ln2b": p["ln2b"],
    }
    # lane-dense padded output projection
    kp["wout"] = jnp.zeros((D_MODEL, V_PAD), jnp.float32).at[:, :NTOKEN].set(p["wout"].T)
    kp["bout"] = jnp.zeros((1, V_PAD), jnp.float32).at[:, :NTOKEN].set(p["bout"])
    # padded embedding table with sqrt(d_model) folded in
    # (extra rows are never selected by the one-hot)
    kp["emb"] = (jnp.zeros((EMB_ROWS, D_MODEL), jnp.float32)
                 .at[:NTOKEN, :].set(p["emb"] * math.sqrt(D_MODEL)))
    # tiled positional-encoding slab for the batch-major flattened rows
    kp["pe_slab"] = jnp.tile(p["pe"][:SEQ], (BATCH, 1)).astype(jnp.float32)  # (BS, D)
    return jax.tree_util.tree_map(jax.block_until_ready, kp)


_PARAM_NAMES = ["wq", "bq", "wk", "bk", "wv", "bv", "wo", "bo",
                "ln1w", "ln1b", "w1", "b1", "w2", "b2", "ln2w", "ln2b",
                "wout", "bout"]


@jax.jit
def transformer_lm_forward(src, kp):
    """src: (SEQ, BATCH) int32, kp: packed params  ->  (SEQ, BATCH, NTOKEN) f32"""
    S, B = src.shape
    assert S == SEQ and B == BATCH

    # batch-major flattened token ids (row n = b*S + s)
    ids = jnp.transpose(src).reshape(B * S, 1).astype(jnp.int32)       # (BS, 1)

    inputs = [ids, kp["emb"], kp["pe_slab"]] + [kp[n] for n in _PARAM_NAMES]

    out = pl.pallas_call(
        transformer_lm_kernel,
        out_shape=jax.ShapeDtypeStruct((B * S, V_PAD), jnp.float32),
        grid=(1,),
        in_specs=[_full_spec(a.shape) for a in inputs],
        out_specs=pl.BlockSpec((B * S, V_PAD), lambda i: (0, 0)),
        compiler_params=pltpu.CompilerParams(dimension_semantics=("arbitrary",)),
    )(*inputs)

    out = out.reshape(B, S, V_PAD)[:, :, :NTOKEN]      # drop the lane padding
    return jnp.transpose(out, (1, 0, 2))               # (S, B, NTOKEN)


# ------------------------- parameter construction -------------------------
def make_params(key):
    def u(key, shape, lo=-0.1, hi=0.1):
        return jax.random.uniform(key, shape, jnp.float32, lo, hi)

    ks = jax.random.split(key, 16)
    p = {}
    # embedding / output linear (matches init_weights: uniform(-0.1,0.1), bias 0)
    p["emb"]  = u(ks[0], (NTOKEN, D_MODEL))
    p["wout"] = u(ks[1], (NTOKEN, D_MODEL))
    p["bout"] = jnp.zeros((1, NTOKEN), jnp.float32)
    # encoder layer weights, stacked over layers (PyTorch layout)
    p["wqkv"] = u(ks[2], (NLAYERS, 3 * D_MODEL, D_MODEL))
    p["bqkv"] = u(ks[3], (NLAYERS, 1, 3 * D_MODEL))
    p["wo"]   = u(ks[4], (NLAYERS, D_MODEL, D_MODEL))
    p["bo"]   = u(ks[5], (NLAYERS, 1, D_MODEL))
    p["ln1w"] = jnp.ones((NLAYERS, 1, D_MODEL), jnp.float32)
    p["ln1b"] = jnp.zeros((NLAYERS, 1, D_MODEL), jnp.float32)
    p["w1"]   = u(ks[6], (NLAYERS, D_HID, D_MODEL))
    p["b1"]   = u(ks[7], (NLAYERS, 1, D_HID))
    p["w2"]   = u(ks[8], (NLAYERS, D_MODEL, D_HID))
    p["b2"]   = u(ks[9], (NLAYERS, 1, D_MODEL))
    p["ln2w"] = jnp.ones((NLAYERS, 1, D_MODEL), jnp.float32)
    p["ln2b"] = jnp.zeros((NLAYERS, 1, D_MODEL), jnp.float32)
    # sinusoidal positional encoding buffer (PositionalEncoding)
    max_len = 64
    pos = np.arange(max_len)[:, None].astype(np.float32)
    div = np.exp(np.arange(0, D_MODEL, 2).astype(np.float32)
                 * (-math.log(10000.0) / D_MODEL))
    pe = np.zeros((max_len, D_MODEL), np.float32)
    pe[:, 0::2] = np.sin(pos * div)
    pe[:, 1::2] = np.cos(pos * div)
    p["pe"] = jnp.asarray(pe)
    return p


# ------------------------- plain-JAX reference (for checking) -------------------------
def reference_forward(src, p):
    S, B = src.shape
    x = p["emb"][src] * math.sqrt(D_MODEL) + p["pe"][:S][:, None, :]
    x = jnp.transpose(x, (1, 0, 2))                        # (B, S, D)
    row = np.arange(S)[:, None]
    col = np.arange(S)[None, :]
    causal = jnp.asarray(col <= row)
    scale = 1.0 / math.sqrt(HEAD_DIM)

    def ln(x, w, b):
        mu = jnp.mean(x, -1, keepdims=True)
        var = jnp.mean((x - mu) ** 2, -1, keepdims=True)
        return (x - mu) / jnp.sqrt(var + LN_EPS) * w + b

    outs = []
    for b_i in range(B):
        xb = x[b_i]
        for l in range(NLAYERS):
            qkv = xb @ p["wqkv"][l].T + p["bqkv"][l]
            q, k, v = qkv[:, :D_MODEL], qkv[:, D_MODEL:2*D_MODEL], qkv[:, 2*D_MODEL:]
            hs = []
            for h in range(NHEAD):
                sl = slice(h * HEAD_DIM, (h + 1) * HEAD_DIM)
                s = (q[:, sl] * scale) @ k[:, sl].T
                s = jnp.where(causal, s, NEG_INF)
                pattn = jax.nn.softmax(s, axis=-1)
                hs.append(pattn @ v[:, sl])
            attn = jnp.concatenate(hs, -1) @ p["wo"][l].T + p["bo"][l]
            xb = ln(xb + attn, p["ln1w"][l], p["ln1b"][l])
            ff = jnp.maximum(xb @ p["w1"][l].T + p["b1"][l], 0.0) @ p["w2"][l].T + p["b2"][l]
            xb = ln(xb + ff, p["ln2w"][l], p["ln2b"][l])
        outs.append(xb @ p["wout"].T + p["bout"])
    out = jnp.stack(outs, 0)                               # (B, S, V)
    return jnp.transpose(out, (1, 0, 2))                   # (S, B, V)


if __name__ == "__main__":
    key = jax.random.PRNGKey(0)
    pkey, skey = jax.random.split(key)
    params = make_params(pkey)
    # TODO(synk): dropout layers are no-ops here (module is evaluated in .eval() mode).
    # src: [seq_len, batch_size] integer token ids, as in the PyTorch forward()
    src = jax.random.randint(skey, (SEQ, BATCH), 0, NTOKEN, dtype=jnp.int32)

    kp = pack_kernel_params(params)          # one-time packing, off the hot path
    out = transformer_lm_forward(src, kp)
    out = jax.block_until_ready(out)

    ref = jax.block_until_ready(reference_forward(src, params))
    assert out.shape == (SEQ, BATCH, NTOKEN)
    np.testing.assert_allclose(np.asarray(out), np.asarray(ref), rtol=2e-3, atol=2e-3)
    print("KERNEL_OK")
</pallas_src>

<mosaic_0001>
module attributes {stable_mosaic.version = 11 : i64} {
  func.func @transformer_lm_kernel(%arg0: i32, %arg1: memref<16x1xi32, #tpu.memory_space<vmem>>, %arg2: memref<32x32xf32, #tpu.memory_space<vmem>>, %arg3: memref<16x32xf32, #tpu.memory_space<vmem>>, %arg4: memref<4x32x16xf32, #tpu.memory_space<vmem>>, %arg5: memref<4x1x16xf32, #tpu.memory_space<vmem>>, %arg6: memref<4x32x16xf32, #tpu.memory_space<vmem>>, %arg7: memref<4x1x16xf32, #tpu.memory_space<vmem>>, %arg8: memref<4x32x16xf32, #tpu.memory_space<vmem>>, %arg9: memref<4x1x16xf32, #tpu.memory_space<vmem>>, %arg10: memref<4x16x32xf32, #tpu.memory_space<vmem>>, %arg11: memref<2x1x32xf32, #tpu.memory_space<vmem>>, %arg12: memref<2x1x32xf32, #tpu.memory_space<vmem>>, %arg13: memref<2x1x32xf32, #tpu.memory_space<vmem>>, %arg14: memref<2x32x64xf32, #tpu.memory_space<vmem>>, %arg15: memref<2x1x64xf32, #tpu.memory_space<vmem>>, %arg16: memref<2x64x32xf32, #tpu.memory_space<vmem>>, %arg17: memref<2x1x32xf32, #tpu.memory_space<vmem>>, %arg18: memref<2x1x32xf32, #tpu.memory_space<vmem>>, %arg19: memref<2x1x32xf32, #tpu.memory_space<vmem>>, %arg20: memref<32x128xf32, #tpu.memory_space<vmem>>, %arg21: memref<1x128xf32, #tpu.memory_space<vmem>>, %arg22: memref<16x128xf32, #tpu.memory_space<vmem>>) attributes {dimension_semantics = [#tpu.dimension_semantics<arbitrary>], iteration_bounds = array<i64: 1>, scalar_prefetch = 0 : i64, scratch_operands = 0 : i64, tpu.core_type = #tpu.core_type<tc>, window_params = [{pipeline_mode = #tpu.pipeline_mode<synchronous>, transform_indices = @transform_0, window_bounds = array<i64: 16, 1>}, {pipeline_mode = #tpu.pipeline_mode<synchronous>, transform_indices = @transform_1, window_bounds = array<i64: 32, 32>}, {pipeline_mode = #tpu.pipeline_mode<synchronous>, transform_indices = @transform_2, window_bounds = array<i64: 16, 32>}, {pipeline_mode = #tpu.pipeline_mode<synchronous>, transform_indices = @transform_3, window_bounds = array<i64: 4, 32, 16>}, {pipeline_mode = #tpu.pipeline_mode<synchronous>, transform_indices = @transform_4, window_bounds = array<i64: 4, 1, 16>}, {pipeline_mode = #tpu.pipeline_mode<synchronous>, transform_indices = @transform_5, window_bounds = array<i64: 4, 32, 16>}, {pipeline_mode = #tpu.pipeline_mode<synchronous>, transform_indices = @transform_6, window_bounds = array<i64: 4, 1, 16>}, {pipeline_mode = #tpu.pipeline_mode<synchronous>, transform_indices = @transform_7, window_bounds = array<i64: 4, 32, 16>}, {pipeline_mode = #tpu.pipeline_mode<synchronous>, transform_indices = @transform_8, window_bounds = array<i64: 4, 1, 16>}, {pipeline_mode = #tpu.pipeline_mode<synchronous>, transform_indices = @transform_9, window_bounds = array<i64: 4, 16, 32>}, {pipeline_mode = #tpu.pipeline_mode<synchronous>, transform_indices = @transform_10, window_bounds = array<i64: 2, 1, 32>}, {pipeline_mode = #tpu.pipeline_mode<synchronous>, transform_indices = @transform_11, window_bounds = array<i64: 2, 1, 32>}, {pipeline_mode = #tpu.pipeline_mode<synchronous>, transform_indices = @transform_12, window_bounds = array<i64: 2, 1, 32>}, {pipeline_mode = #tpu.pipeline_mode<synchronous>, transform_indices = @transform_13, window_bounds = array<i64: 2, 32, 64>}, {pipeline_mode = #tpu.pipeline_mode<synchronous>, transform_indices = @transform_14, window_bounds = array<i64: 2, 1, 64>}, {pipeline_mode = #tpu.pipeline_mode<synchronous>, transform_indices = @transform_15, window_bounds = array<i64: 2, 64, 32>}, {pipeline_mode = #tpu.pipeline_mode<synchronous>, transform_indices = @transform_16, window_bounds = array<i64: 2, 1, 32>}, {pipeline_mode = #tpu.pipeline_mode<synchronous>, transform_indices = @transform_17, window_bounds = array<i64: 2, 1, 32>}, {pipeline_mode = #tpu.pipeline_mode<synchronous>, transform_indices = @transform_18, window_bounds = array<i64: 2, 1, 32>}, {pipeline_mode = #tpu.pipeline_mode<synchronous>, transform_indices = @transform_19, window_bounds = array<i64: 32, 128>}, {pipeline_mode = #tpu.pipeline_mode<synchronous>, transform_indices = @transform_20, window_bounds = array<i64: 1, 128>}, {pipeline_mode = #tpu.pipeline_mode<synchronous>, transform_indices = @transform_21, window_bounds = array<i64: 16, 128>}]} {
    %c0 = arith.constant 0 : index
    %c0_0 = arith.constant 0 : index
    %0 = vector.load %arg1[%c0, %c0_0] : memref<16x1xi32, #tpu.memory_space<vmem>>, vector<16x1xi32>
    %1 = tpu.iota {dimensions = array<i32: 1>} : vector<16x32xi32>
    %2 = vector.broadcast %0 : vector<16x1xi32> to vector<16x32xi32>
    %3 = arith.cmpi eq, %1, %2 : vector<16x32xi32>
    %4 = arith.extui %3 : vector<16x32xi1> to vector<16x32xi32>
    %5 = arith.sitofp %4 : vector<16x32xi32> to vector<16x32xf32>
    %c0_1 = arith.constant 0 : index
    %c0_2 = arith.constant 0 : index
    %6 = vector.load %arg2[%c0_1, %c0_2] : memref<32x32xf32, #tpu.memory_space<vmem>>, vector<32x32xf32>
    %cst = arith.constant dense<0.000000e+00> : vector<16x32xf32>
    %7 = tpu.matmul %5, %6, %cst {dimension_numbers = #tpu.dot_dimension_numbers<[1], [0], [0], [1], [0, 0, 1, 1], [], []>} : vector<16x32xf32>, vector<32x32xf32>, vector<16x32xf32> -> vector<16x32xf32>
    %c0_3 = arith.constant 0 : index
    %c0_4 = arith.constant 0 : index
    %8 = vector.load %arg3[%c0_3, %c0_4] : memref<16x32xf32, #tpu.memory_space<vmem>>, vector<16x32xf32>
    %9 = arith.addf %7, %8 : vector<16x32xf32>
    %10 = tpu.iota {dimensions = array<i32: 0>} : vector<16x16xi32>
    %11 = tpu.iota {dimensions = array<i32: 1>} : vector<16x16xi32>
    %c3_i32 = arith.constant 3 : i32
    %12 = vector.broadcast %c3_i32 : i32 to vector<16x16xi32>
    %13 = arith.shrsi %10, %12 : vector<16x16xi32>
    %c3_i32_5 = arith.constant 3 : i32
    %14 = vector.broadcast %c3_i32_5 : i32 to vector<16x16xi32>
    %15 = arith.shrsi %11, %14 : vector<16x16xi32>
    %16 = arith.cmpi eq, %13, %15 : vector<16x16xi32>
    %17 = arith.cmpi sle, %11, %10 : vector<16x16xi32>
    %18 = arith.andi %16, %17 : vector<16x16xi1>
    %c0_6 = arith.constant 0 : index
    %c0_7 = arith.constant 0 : index
    %c0_8 = arith.constant 0 : index
    %19 = vector.load %arg4[%c0_6, %c0_7, %c0_8] : memref<4x32x16xf32, #tpu.memory_space<vmem>>, vector<1x32x16xf32>
    %20 = vector.shape_cast %19 : vector<1x32x16xf32> to vector<32x16xf32>
    %cst_9 = arith.constant dense<0.000000e+00> : vector<16x16xf32>
    %21 = tpu.matmul %9, %20, %cst_9 {dimension_numbers = #tpu.dot_dimension_numbers<[1], [0], [0], [1], [0, 0, 1, 1], [], []>} : vector<16x32xf32>, vector<32x16xf32>, vector<16x16xf32> -> vector<16x16xf32>
    %c0_10 = arith.constant 0 : index
    %c0_11 = arith.constant 0 : index
    %c0_12 = arith.constant 0 : index
    %22 = vector.load %arg5[%c0_10, %c0_11, %c0_12] : memref<4x1x16xf32, #tpu.memory_space<vmem>>, vector<1x1x16xf32>
    %23 = vector.shape_cast %22 : vector<1x1x16xf32> to vector<1x16xf32>
    %24 = vector.broadcast %23 : vector<1x16xf32> to vector<16x16xf32>
    %25 = arith.addf %21, %24 : vector<16x16xf32>
    %c0_13 = arith.constant 0 : index
    %c0_14 = arith.constant 0 : index
    %c0_15 = arith.constant 0 : index
    %26 = vector.load %arg6[%c0_13, %c0_14, %c0_15] : memref<4x32x16xf32, #tpu.memory_space<vmem>>, vector<1x32x16xf32>
    %27 = vector.shape_cast %26 : vector<1x32x16xf32> to vector<32x16xf32>
    %cst_16 = arith.constant dense<0.000000e+00> : vector<16x16xf32>
    %28 = tpu.matmul %9, %27, %cst_16 {dimension_numbers = #tpu.dot_dimension_numbers<[1], [0], [0], [1], [0, 0, 1, 1], [], []>} : vector<16x32xf32>, vector<32x16xf32>, vector<16x16xf32> -> vector<16x16xf32>
    %c0_17 = arith.constant 0 : index
    %c0_18 = arith.constant 0 : index
    %c0_19 = arith.constant 0 : index
    %29 = vector.load %arg7[%c0_17, %c0_18, %c0_19] : memref<4x1x16xf32, #tpu.memory_space<vmem>>, vector<1x1x16xf32>
    %30 = vector.shape_cast %29 : vector<1x1x16xf32> to vector<1x16xf32>
    %31 = vector.broadcast %30 : vector<1x16xf32> to vector<16x16xf32>
    %32 = arith.addf %28, %31 : vector<16x16xf32>
    %c0_20 = arith.constant 0 : index
    %c0_21 = arith.constant 0 : index
    %c0_22 = arith.constant 0 : index
    %33 = vector.load %arg8[%c0_20, %c0_21, %c0_22] : memref<4x32x16xf32, #tpu.memory_space<vmem>>, vector<1x32x16xf32>
    %34 = vector.shape_cast %33 : vector<1x32x16xf32> to vector<32x16xf32>
    %cst_23 = arith.constant dense<0.000000e+00> : vector<16x16xf32>
    %35 = tpu.matmul %9, %34, %cst_23 {dimension_numbers = #tpu.dot_dimension_numbers<[1], [0], [0], [1], [0, 0, 1, 1], [], []>} : vector<16x32xf32>, vector<32x16xf32>, vector<16x16xf32> -> vector<16x16xf32>
    %c0_24 = arith.constant 0 : index
    %c0_25 = arith.constant 0 : index
    %c0_26 = arith.constant 0 : index
    %36 = vector.load %arg9[%c0_24, %c0_25, %c0_26] : memref<4x1x16xf32, #tpu.memory_space<vmem>>, vector<1x1x16xf32>
    %37 = vector.shape_cast %36 : vector<1x1x16xf32> to vector<1x16xf32>
    %38 = vector.broadcast %37 : vector<1x16xf32> to vector<16x16xf32>
    %39 = arith.addf %35, %38 : vector<16x16xf32>
    "tpu.trace_start"() <{level = 10 : i32, message = "qk,mk->qm"}> : () -> ()
    %cst_27 = arith.constant dense<0.000000e+00> : vector<16x16xf32>
    %40 = tpu.matmul %25, %32, %cst_27 {dimension_numbers = #tpu.dot_dimension_numbers<[1], [1], [0], [0], [0, 0, 1, 0], [], []>} : vector<16x16xf32>, vector<16x16xf32>, vector<16x16xf32> -> vector<16x16xf32>
    %cst_28 = arith.constant -1.000000e+30 : f32
    "tpu.trace_stop"() : () -> ()
    %41 = vector.broadcast %cst_28 : f32 to vector<16x16xf32>
    %42 = arith.select %18, %40, %41 : vector<16x16xi1>, vector<16x16xf32>
    %cst_29 = arith.constant dense<0xFF800000> : vector<16xf32>
    %43 = vector.multi_reduction <maximumf>, %42, %cst_29 [1] : vector<16x16xf32> to vector<16xf32>
    %44 = vector.shape_cast %43 : vector<16xf32> to vector<16x1xf32>
    %45 = vector.broadcast %44 : vector<16x1xf32> to vector<16x16xf32>
    %46 = arith.subf %42, %45 : vector<16x16xf32>
    %47 = math.exp %46 : vector<16x16xf32>
    %cst_30 = arith.constant dense<0.000000e+00> : vector<16xf32>
    %48 = vector.multi_reduction <add>, %47, %cst_30 [1] : vector<16x16xf32> to vector<16xf32>
    %49 = vector.shape_cast %48 : vector<16xf32> to vector<16x1xf32>
    %50 = tpu.reciprocal %49 {approx = true} : vector<16x1xf32> -> vector<16x1xf32>
    %51 = vector.broadcast %50 : vector<16x1xf32> to vector<16x16xf32>
    %52 = arith.mulf %47, %51 : vector<16x16xf32>
    %cst_31 = arith.constant dense<0.000000e+00> : vector<16x16xf32>
    %53 = tpu.matmul %52, %39, %cst_31 {dimension_numbers = #tpu.dot_dimension_numbers<[1], [0], [0], [1], [0, 0, 1, 1], [], []>} : vector<16x16xf32>, vector<16x16xf32>, vector<16x16xf32> -> vector<16x16xf32>
    %c0_32 = arith.constant 0 : index
    %c0_33 = arith.constant 0 : index
    %c0_34 = arith.constant 0 : index
    %54 = vector.load %arg10[%c0_32, %c0_33, %c0_34] : memref<4x16x32xf32, #tpu.memory_space<vmem>>, vector<1x16x32xf32>
    %55 = vector.shape_cast %54 : vector<1x16x32xf32> to vector<16x32xf32>
    %cst_35 = arith.constant dense<0.000000e+00> : vector<16x32xf32>
    %56 = tpu.matmul %53, %55, %cst_35 {dimension_numbers = #tpu.dot_dimension_numbers<[1], [0], [0], [1], [0, 0, 1, 1], [], []>} : vector<16x16xf32>, vector<16x32xf32>, vector<16x32xf32> -> vector<16x32xf32>
    %c1 = arith.constant 1 : index
    %c0_36 = arith.constant 0 : index
    %c0_37 = arith.constant 0 : index
    %57 = vector.load %arg4[%c1, %c0_36, %c0_37] : memref<4x32x16xf32, #tpu.memory_space<vmem>>, vector<1x32x16xf32>
    %58 = vector.shape_cast %57 : vector<1x32x16xf32> to vector<32x16xf32>
    %cst_38 = arith.constant dense<0.000000e+00> : vector<16x16xf32>
    %59 = tpu.matmul %9, %58, %cst_38 {dimension_numbers = #tpu.dot_dimension_numbers<[1], [0], [0], [1], [0, 0, 1, 1], [], []>} : vector<16x32xf32>, vector<32x16xf32>, vector<16x16xf32> -> vector<16x16xf32>
    %c1_39 = arith.constant 1 : index
    %c0_40 = arith.constant 0 : index
    %c0_41 = arith.constant 0 : index
    %60 = vector.load %arg5[%c1_39, %c0_40, %c0_41] : memref<4x1x16xf32, #tpu.memory_space<vmem>>, vector<1x1x16xf32>
    %61 = vector.shape_cast %60 : vector<1x1x16xf32> to vector<1x16xf32>
    %62 = vector.broadcast %61 : vector<1x16xf32> to vector<16x16xf32>
    %63 = arith.addf %59, %62 : vector<16x16xf32>
    %c1_42 = arith.constant 1 : index
    %c0_43 = arith.constant 0 : index
    %c0_44 = arith.constant 0 : index
    %64 = vector.load %arg6[%c1_42, %c0_43, %c0_44] : memref<4x32x16xf32, #tpu.memory_space<vmem>>, vector<1x32x16xf32>
    %65 = vector.shape_cast %64 : vector<1x32x16xf32> to vector<32x16xf32>
    %cst_45 = arith.constant dense<0.000000e+00> : vector<16x16xf32>
    %66 = tpu.matmul %9, %65, %cst_45 {dimension_numbers = #tpu.dot_dimension_numbers<[1], [0], [0], [1], [0, 0, 1, 1], [], []>} : vector<16x32xf32>, vector<32x16xf32>, vector<16x16xf32> -> vector<16x16xf32>
    %c1_46 = arith.constant 1 : index
    %c0_47 = arith.constant 0 : index
    %c0_48 = arith.constant 0 : index
    %67 = vector.load %arg7[%c1_46, %c0_47, %c0_48] : memref<4x1x16xf32, #tpu.memory_space<vmem>>, vector<1x1x16xf32>
    %68 = vector.shape_cast %67 : vector<1x1x16xf32> to vector<1x16xf32>
    %69 = vector.broadcast %68 : vector<1x16xf32> to vector<16x16xf32>
    %70 = arith.addf %66, %69 : vector<16x16xf32>
    %c1_49 = arith.constant 1 : index
    %c0_50 = arith.constant 0 : index
    %c0_51 = arith.constant 0 : index
    %71 = vector.load %arg8[%c1_49, %c0_50, %c0_51] : memref<4x32x16xf32, #tpu.memory_space<vmem>>, vector<1x32x16xf32>
    %72 = vector.shape_cast %71 : vector<1x32x16xf32> to vector<32x16xf32>
    %cst_52 = arith.constant dense<0.000000e+00> : vector<16x16xf32>
    %73 = tpu.matmul %9, %72, %cst_52 {dimension_numbers = #tpu.dot_dimension_numbers<[1], [0], [0], [1], [0, 0, 1, 1], [], []>} : vector<16x32xf32>, vector<32x16xf32>, vector<16x16xf32> -> vector<16x16xf32>
    %c1_53 = arith.constant 1 : index
    %c0_54 = arith.constant 0 : index
    %c0_55 = arith.constant 0 : index
    %74 = vector.load %arg9[%c1_53, %c0_54, %c0_55] : memref<4x1x16xf32, #tpu.memory_space<vmem>>, vector<1x1x16xf32>
    %75 = vector.shape_cast %74 : vector<1x1x16xf32> to vector<1x16xf32>
    %76 = vector.broadcast %75 : vector<1x16xf32> to vector<16x16xf32>
    %77 = arith.addf %73, %76 : vector<16x16xf32>
    "tpu.trace_start"() <{level = 10 : i32, message = "qk,mk->qm"}> : () -> ()
    %cst_56 = arith.constant dense<0.000000e+00> : vector<16x16xf32>
    %78 = tpu.matmul %63, %70, %cst_56 {dimension_numbers = #tpu.dot_dimension_numbers<[1], [1], [0], [0], [0, 0, 1, 0], [], []>} : vector<16x16xf32>, vector<16x16xf32>, vector<16x16xf32> -> vector<16x16xf32>
    %cst_57 = arith.constant -1.000000e+30 : f32
    "tpu.trace_stop"() : () -> ()
    %79 = vector.broadcast %cst_57 : f32 to vector<16x16xf32>
    %80 = arith.select %18, %78, %79 : vector<16x16xi1>, vector<16x16xf32>
    %cst_58 = arith.constant dense<0xFF800000> : vector<16xf32>
    %81 = vector.multi_reduction <maximumf>, %80, %cst_58 [1] : vector<16x16xf32> to vector<16xf32>
    %82 = vector.shape_cast %81 : vector<16xf32> to vector<16x1xf32>
    %83 = vector.broadcast %82 : vector<16x1xf32> to vector<16x16xf32>
    %84 = arith.subf %80, %83 : vector<16x16xf32>
    %85 = math.exp %84 : vector<16x16xf32>
    %cst_59 = arith.constant dense<0.000000e+00> : vector<16xf32>
    %86 = vector.multi_reduction <add>, %85, %cst_59 [1] : vector<16x16xf32> to vector<16xf32>
    %87 = vector.shape_cast %86 : vector<16xf32> to vector<16x1xf32>
    %88 = tpu.reciprocal %87 {approx = true} : vector<16x1xf32> -> vector<16x1xf32>
    %89 = vector.broadcast %88 : vector<16x1xf32> to vector<16x16xf32>
    %90 = arith.mulf %85, %89 : vector<16x16xf32>
    %cst_60 = arith.constant dense<0.000000e+00> : vector<16x16xf32>
    %91 = tpu.matmul %90, %77, %cst_60 {dimension_numbers = #tpu.dot_dimension_numbers<[1], [0], [0], [1], [0, 0, 1, 1], [], []>} : vector<16x16xf32>, vector<16x16xf32>, vector<16x16xf32> -> vector<16x16xf32>
    %c1_61 = arith.constant 1 : index
    %c0_62 = arith.constant 0 : index
    %c0_63 = arith.constant 0 : index
    %92 = vector.load %arg10[%c1_61, %c0_62, %c0_63] : memref<4x16x32xf32, #tpu.memory_space<vmem>>, vector<1x16x32xf32>
    %93 = vector.shape_cast %92 : vector<1x16x32xf32> to vector<16x32xf32>
    %cst_64 = arith.constant dense<0.000000e+00> : vector<16x32xf32>
    %94 = tpu.matmul %91, %93, %cst_64 {dimension_numbers = #tpu.dot_dimension_numbers<[1], [0], [0], [1], [0, 0, 1, 1], [], []>} : vector<16x16xf32>, vector<16x32xf32>, vector<16x32xf32> -> vector<16x32xf32>
    %95 = arith.addf %56, %94 : vector<16x32xf32>
    %c0_65 = arith.constant 0 : index
    %c0_66 = arith.constant 0 : index
    %c0_67 = arith.constant 0 : index
    %96 = vector.load %arg11[%c0_65, %c0_66, %c0_67] : memref<2x1x32xf32, #tpu.memory_space<vmem>>, vector<1x1x32xf32>
    %97 = vector.shape_cast %96 : vector<1x1x32xf32> to vector<1x32xf32>
    %98 = vector.broadcast %97 : vector<1x32xf32> to vector<16x32xf32>
    %99 = arith.addf %95, %98 : vector<16x32xf32>
    %100 = arith.addf %9, %99 : vector<16x32xf32>
    %c0_68 = arith.constant 0 : index
    %c0_69 = arith.constant 0 : index
    %c0_70 = arith.constant 0 : index
    %101 = vector.load %arg12[%c0_68, %c0_69, %c0_70] : memref<2x1x32xf32, #tpu.memory_space<vmem>>, vector<1x1x32xf32>
    %102 = vector.shape_cast %101 : vector<1x1x32xf32> to vector<1x32xf32>
    %c0_71 = arith.constant 0 : index
    %c0_72 = arith.constant 0 : index
    %c0_73 = arith.constant 0 : index
    %103 = vector.load %arg13[%c0_71, %c0_72, %c0_73] : memref<2x1x32xf32, #tpu.memory_space<vmem>>, vector<1x1x32xf32>
    %104 = vector.shape_cast %103 : vector<1x1x32xf32> to vector<1x32xf32>
    %cst_74 = arith.constant dense<0.000000e+00> : vector<16xf32>
    %105 = vector.multi_reduction <add>, %100, %cst_74 [1] : vector<16x32xf32> to vector<16xf32>
    %106 = vector.shape_cast %105 : vector<16xf32> to vector<16x1xf32>
    %cst_75 = arith.constant 3.200000e+01 : f32
    %107 = vector.broadcast %cst_75 : f32 to vector<16x1xf32>
    %108 = arith.divf %106, %107 : vector<16x1xf32>
    %109 = vector.broadcast %108 : vector<16x1xf32> to vector<16x32xf32>
    %110 = arith.subf %100, %109 : vector<16x32xf32>
    %111 = arith.mulf %110, %110 : vector<16x32xf32>
    %cst_76 = arith.constant dense<0.000000e+00> : vector<16xf32>
    %112 = vector.multi_reduction <add>, %111, %cst_76 [1] : vector<16x32xf32> to vector<16xf32>
    %113 = vector.shape_cast %112 : vector<16xf32> to vector<16x1xf32>
    %cst_77 = arith.constant 3.200000e+01 : f32
    %114 = vector.broadcast %cst_77 : f32 to vector<16x1xf32>
    %115 = arith.divf %113, %114 : vector<16x1xf32>
    %116 = vector.broadcast %108 : vector<16x1xf32> to vector<16x32xf32>
    %117 = arith.subf %100, %116 : vector<16x32xf32>
    %cst_78 = arith.constant 9.99999974E-6 : f32
    %118 = vector.broadcast %cst_78 : f32 to vector<16x1xf32>
    %119 = arith.addf %115, %118 : vector<16x1xf32>
    %120 = math.rsqrt %119 : vector<16x1xf32>
    %121 = vector.broadcast %120 : vector<16x1xf32> to vector<16x32xf32>
    %122 = arith.mulf %117, %121 : vector<16x32xf32>
    %123 = vector.broadcast %102 : vector<1x32xf32> to vector<16x32xf32>
    %124 = arith.mulf %122, %123 : vector<16x32xf32>
    %125 = vector.broadcast %104 : vector<1x32xf32> to vector<16x32xf32>
    %126 = arith.addf %124, %125 : vector<16x32xf32>
    %c0_79 = arith.constant 0 : index
    %c0_80 = arith.constant 0 : index
    %c0_81 = arith.constant 0 : index
    %127 = vector.load %arg14[%c0_79, %c0_80, %c0_81] : memref<2x32x64xf32, #tpu.memory_space<vmem>>, vector<1x32x64xf32>
    %128 = vector.shape_cast %127 : vector<1x32x64xf32> to vector<32x64xf32>
    %cst_82 = arith.constant dense<0.000000e+00> : vector<16x64xf32>
    %129 = tpu.matmul %126, %128, %cst_82 {dimension_numbers = #tpu.dot_dimension_numbers<[1], [0], [0], [1], [0, 0, 1, 1], [], []>} : vector<16x32xf32>, vector<32x64xf32>, vector<16x64xf32> -> vector<16x64xf32>
    %c0_83 = arith.constant 0 : index
    %c0_84 = arith.constant 0 : index
    %c0_85 = arith.constant 0 : index
    %130 = vector.load %arg15[%c0_83, %c0_84, %c0_85] : memref<2x1x64xf32, #tpu.memory_space<vmem>>, vector<1x1x64xf32>
    %131 = vector.shape_cast %130 : vector<1x1x64xf32> to vector<1x64xf32>
    %132 = vector.broadcast %131 : vector<1x64xf32> to vector<16x64xf32>
    %133 = arith.addf %129, %132 : vector<16x64xf32>
    %cst_86 = arith.constant 0.000000e+00 : f32
    %134 = vector.broadcast %cst_86 : f32 to vector<16x64xf32>
    %135 = arith.maximumf %133, %134 : vector<16x64xf32>
    %c0_87 = arith.constant 0 : index
    %c0_88 = arith.constant 0 : index
    %c0_89 = arith.constant 0 : index
    %136 = vector.load %arg16[%c0_87, %c0_88, %c0_89] : memref<2x64x32xf32, #tpu.memory_space<vmem>>, vector<1x64x32xf32>
    %137 = vector.shape_cast %136 : vector<1x64x32xf32> to vector<64x32xf32>
    %cst_90 = arith.constant dense<0.000000e+00> : vector<16x32xf32>
    %138 = tpu.matmul %135, %137, %cst_90 {dimension_numbers = #tpu.dot_dimension_numbers<[1], [0], [0], [1], [0, 0, 1, 1], [], []>} : vector<16x64xf32>, vector<64x32xf32>, vector<16x32xf32> -> vector<16x32xf32>
    %c0_91 = arith.constant 0 : index
    %c0_92 = arith.constant 0 : index
    %c0_93 = arith.constant 0 : index
    %139 = vector.load %arg17[%c0_91, %c0_92, %c0_93] : memref<2x1x32xf32, #tpu.memory_space<vmem>>, vector<1x1x32xf32>
    %140 = vector.shape_cast %139 : vector<1x1x32xf32> to vector<1x32xf32>
    %141 = vector.broadcast %140 : vector<1x32xf32> to vector<16x32xf32>
    %142 = arith.addf %138, %141 : vector<16x32xf32>
    %143 = arith.addf %126, %142 : vector<16x32xf32>
    %c0_94 = arith.constant 0 : index
    %c0_95 = arith.constant 0 : index
    %c0_96 = arith.constant 0 : index
    %144 = vector.load %arg18[%c0_94, %c0_95, %c0_96] : memref<2x1x32xf32, #tpu.memory_space<vmem>>, vector<1x1x32xf32>
    %145 = vector.shape_cast %144 : vector<1x1x32xf32> to vector<1x32xf32>
    %c0_97 = arith.constant 0 : index
    %c0_98 = arith.constant 0 : index
    %c0_99 = arith.constant 0 : index
    %146 = vector.load %arg19[%c0_97, %c0_98, %c0_99] : memref<2x1x32xf32, #tpu.memory_space<vmem>>, vector<1x1x32xf32>
    %147 = vector.shape_cast %146 : vector<1x1x32xf32> to vector<1x32xf32>
    %cst_100 = arith.constant dense<0.000000e+00> : vector<16xf32>
    %148 = vector.multi_reduction <add>, %143, %cst_100 [1] : vector<16x32xf32> to vector<16xf32>
    %149 = vector.shape_cast %148 : vector<16xf32> to vector<16x1xf32>
    %cst_101 = arith.constant 3.200000e+01 : f32
    %150 = vector.broadcast %cst_101 : f32 to vector<16x1xf32>
    %151 = arith.divf %149, %150 : vector<16x1xf32>
    %152 = vector.broadcast %151 : vector<16x1xf32> to vector<16x32xf32>
    %153 = arith.subf %143, %152 : vector<16x32xf32>
    %154 = arith.mulf %153, %153 : vector<16x32xf32>
    %cst_102 = arith.constant dense<0.000000e+00> : vector<16xf32>
    %155 = vector.multi_reduction <add>, %154, %cst_102 [1] : vector<16x32xf32> to vector<16xf32>
    %156 = vector.shape_cast %155 : vector<16xf32> to vector<16x1xf32>
    %cst_103 = arith.constant 3.200000e+01 : f32
    %157 = vector.broadcast %cst_103 : f32 to vector<16x1xf32>
    %158 = arith.divf %156, %157 : vector<16x1xf32>
    %159 = vector.broadcast %151 : vector<16x1xf32> to vector<16x32xf32>
    %160 = arith.subf %143, %159 : vector<16x32xf32>
    %cst_104 = arith.constant 9.99999974E-6 : f32
    %161 = vector.broadcast %cst_104 : f32 to vector<16x1xf32>
    %162 = arith.addf %158, %161 : vector<16x1xf32>
    %163 = math.rsqrt %162 : vector<16x1xf32>
    %164 = vector.broadcast %163 : vector<16x1xf32> to vector<16x32xf32>
    %165 = arith.mulf %160, %164 : vector<16x32xf32>
    %166 = vector.broadcast %145 : vector<1x32xf32> to vector<16x32xf32>
    %167 = arith.mulf %165, %166 : vector<16x32xf32>
    %168 = vector.broadcast %147 : vector<1x32xf32> to vector<16x32xf32>
    %169 = arith.addf %167, %168 : vector<16x32xf32>
    %c2 = arith.constant 2 : index
    %c0_105 = arith.constant 0 : index
    %c0_106 = arith.constant 0 : index
    %170 = vector.load %arg4[%c2, %c0_105, %c0_106] : memref<4x32x16xf32, #tpu.memory_space<vmem>>, vector<1x32x16xf32>
    %171 = vector.shape_cast %170 : vector<1x32x16xf32> to vector<32x16xf32>
    %cst_107 = arith.constant dense<0.000000e+00> : vector<16x16xf32>
    %172 = tpu.matmul %169, %171, %cst_107 {dimension_numbers = #tpu.dot_dimension_numbers<[1], [0], [0], [1], [0, 0, 1, 1], [], []>} : vector<16x32xf32>, vector<32x16xf32>, vector<16x16xf32> -> vector<16x16xf32>
    %c2_108 = arith.constant 2 : index
    %c0_109 = arith.constant 0 : index
    %c0_110 = arith.constant 0 : index
    %173 = vector.load %arg5[%c2_108, %c0_109, %c0_110] : memref<4x1x16xf32, #tpu.memory_space<vmem>>, vector<1x1x16xf32>
    %174 = vector.shape_cast %173 : vector<1x1x16xf32> to vector<1x16xf32>
    %175 = vector.broadcast %174 : vector<1x16xf32> to vector<16x16xf32>
    %176 = arith.addf %172, %175 : vector<16x16xf32>
    %c2_111 = arith.constant 2 : index
    %c0_112 = arith.constant 0 : index
    %c0_113 = arith.constant 0 : index
    %177 = vector.load %arg6[%c2_111, %c0_112, %c0_113] : memref<4x32x16xf32, #tpu.memory_space<vmem>>, vector<1x32x16xf32>
    %178 = vector.shape_cast %177 : vector<1x32x16xf32> to vector<32x16xf32>
    %cst_114 = arith.constant dense<0.000000e+00> : vector<16x16xf32>
    %179 = tpu.matmul %169, %178, %cst_114 {dimension_numbers = #tpu.dot_dimension_numbers<[1], [0], [0], [1], [0, 0, 1, 1], [], []>} : vector<16x32xf32>, vector<32x16xf32>, vector<16x16xf32> -> vector<16x16xf32>
    %c2_115 = arith.constant 2 : index
    %c0_116 = arith.constant 0 : index
    %c0_117 = arith.constant 0 : index
    %180 = vector.load %arg7[%c2_115, %c0_116, %c0_117] : memref<4x1x16xf32, #tpu.memory_space<vmem>>, vector<1x1x16xf32>
    %181 = vector.shape_cast %180 : vector<1x1x16xf32> to vector<1x16xf32>
    %182 = vector.broadcast %181 : vector<1x16xf32> to vector<16x16xf32>
    %183 = arith.addf %179, %182 : vector<16x16xf32>
    %c2_118 = arith.constant 2 : index
    %c0_119 = arith.constant 0 : index
    %c0_120 = arith.constant 0 : index
    %184 = vector.load %arg8[%c2_118, %c0_119, %c0_120] : memref<4x32x16xf32, #tpu.memory_space<vmem>>, vector<1x32x16xf32>
    %185 = vector.shape_cast %184 : vector<1x32x16xf32> to vector<32x16xf32>
    %cst_121 = arith.constant dense<0.000000e+00> : vector<16x16xf32>
    %186 = tpu.matmul %169, %185, %cst_121 {dimension_numbers = #tpu.dot_dimension_numbers<[1], [0], [0], [1], [0, 0, 1, 1], [], []>} : vector<16x32xf32>, vector<32x16xf32>, vector<16x16xf32> -> vector<16x16xf32>
    %c2_122 = arith.constant 2 : index
    %c0_123 = arith.constant 0 : index
    %c0_124 = arith.constant 0 : index
    %187 = vector.load %arg9[%c2_122, %c0_123, %c0_124] : memref<4x1x16xf32, #tpu.memory_space<vmem>>, vector<1x1x16xf32>
    %188 = vector.shape_cast %187 : vector<1x1x16xf32> to vector<1x16xf32>
    %189 = vector.broadcast %188 : vector<1x16xf32> to vector<16x16xf32>
    %190 = arith.addf %186, %189 : vector<16x16xf32>
    "tpu.trace_start"() <{level = 10 : i32, message = "qk,mk->qm"}> : () -> ()
    %cst_125 = arith.constant dense<0.000000e+00> : vector<16x16xf32>
    %191 = tpu.matmul %176, %183, %cst_125 {dimension_numbers = #tpu.dot_dimension_numbers<[1], [1], [0], [0], [0, 0, 1, 0], [], []>} : vector<16x16xf32>, vector<16x16xf32>, vector<16x16xf32> -> vector<16x16xf32>
    %cst_126 = arith.constant -1.000000e+30 : f32
    "tpu.trace_stop"() : () -> ()
    %192 = vector.broadcast %cst_126 : f32 to vector<16x16xf32>
    %193 = arith.select %18, %191, %192 : vector<16x16xi1>, vector<16x16xf32>
    %cst_127 = arith.constant dense<0xFF800000> : vector<16xf32>
    %194 = vector.multi_reduction <maximumf>, %193, %cst_127 [1] : vector<16x16xf32> to vector<16xf32>
    %195 = vector.shape_cast %194 : vector<16xf32> to vector<16x1xf32>
    %196 = vector.broadcast %195 : vector<16x1xf32> to vector<16x16xf32>
    %197 = arith.subf %193, %196 : vector<16x16xf32>
    %198 = math.exp %197 : vector<16x16xf32>
    %cst_128 = arith.constant dense<0.000000e+00> : vector<16xf32>
    %199 = vector.multi_reduction <add>, %198, %cst_128 [1] : vector<16x16xf32> to vector<16xf32>
    %200 = vector.shape_cast %199 : vector<16xf32> to vector<16x1xf32>
    %201 = tpu.reciprocal %200 {approx = true} : vector<16x1xf32> -> vector<16x1xf32>
    %202 = vector.broadcast %201 : vector<16x1xf32> to vector<16x16xf32>
    %203 = arith.mulf %198, %202 : vector<16x16xf32>
    %cst_129 = arith.constant dense<0.000000e+00> : vector<16x16xf32>
    %204 = tpu.matmul %203, %190, %cst_129 {dimension_numbers = #tpu.dot_dimension_numbers<[1], [0], [0], [1], [0, 0, 1, 1], [], []>} : vector<16x16xf32>, vector<16x16xf32>, vector<16x16xf32> -> vector<16x16xf32>
    %c2_130 = arith.constant 2 : index
    %c0_131 = arith.constant 0 : index
    %c0_132 = arith.constant 0 : index
    %205 = vector.load %arg10[%c2_130, %c0_131, %c0_132] : memref<4x16x32xf32, #tpu.memory_space<vmem>>, vector<1x16x32xf32>
    %206 = vector.shape_cast %205 : vector<1x16x32xf32> to vector<16x32xf32>
    %cst_133 = arith.constant dense<0.000000e+00> : vector<16x32xf32>
    %207 = tpu.matmul %204, %206, %cst_133 {dimension_numbers = #tpu.dot_dimension_numbers<[1], [0], [0], [1], [0, 0, 1, 1], [], []>} : vector<16x16xf32>, vector<16x32xf32>, vector<16x32xf32> -> vector<16x32xf32>
    %c3 = arith.constant 3 : index
    %c0_134 = arith.constant 0 : index
    %c0_135 = arith.constant 0 : index
    %208 = vector.load %arg4[%c3, %c0_134, %c0_135] : memref<4x32x16xf32, #tpu.memory_space<vmem>>, vector<1x32x16xf32>
    %209 = vector.shape_cast %208 : vector<1x32x16xf32> to vector<32x16xf32>
    %cst_136 = arith.constant dense<0.000000e+00> : vector<16x16xf32>
    %210 = tpu.matmul %169, %209, %cst_136 {dimension_numbers = #tpu.dot_dimension_numbers<[1], [0], [0], [1], [0, 0, 1, 1], [], []>} : vector<16x32xf32>, vector<32x16xf32>, vector<16x16xf32> -> vector<16x16xf32>
    %c3_137 = arith.constant 3 : index
    %c0_138 = arith.constant 0 : index
    %c0_139 = arith.constant 0 : index
    %211 = vector.load %arg5[%c3_137, %c0_138, %c0_139] : memref<4x1x16xf32, #tpu.memory_space<vmem>>, vector<1x1x16xf32>
    %212 = vector.shape_cast %211 : vector<1x1x16xf32> to vector<1x16xf32>
    %213 = vector.broadcast %212 : vector<1x16xf32> to vector<16x16xf32>
    %214 = arith.addf %210, %213 : vector<16x16xf32>
    %c3_140 = arith.constant 3 : index
    %c0_141 = arith.constant 0 : index
    %c0_142 = arith.constant 0 : index
    %215 = vector.load %arg6[%c3_140, %c0_141, %c0_142] : memref<4x32x16xf32, #tpu.memory_space<vmem>>, vector<1x32x16xf32>
    %216 = vector.shape_cast %215 : vector<1x32x16xf32> to vector<32x16xf32>
    %cst_143 = arith.constant dense<0.000000e+00> : vector<16x16xf32>
    %217 = tpu.matmul %169, %216, %cst_143 {dimension_numbers = #tpu.dot_dimension_numbers<[1], [0], [0], [1], [0, 0, 1, 1], [], []>} : vector<16x32xf32>, vector<32x16xf32>, vector<16x16xf32> -> vector<16x16xf32>
    %c3_144 = arith.constant 3 : index
    %c0_145 = arith.constant 0 : index
    %c0_146 = arith.constant 0 : index
    %218 = vector.load %arg7[%c3_144, %c0_145, %c0_146] : memref<4x1x16xf32, #tpu.memory_space<vmem>>, vector<1x1x16xf32>
    %219 = vector.shape_cast %218 : vector<1x1x16xf32> to vector<1x16xf32>
    %220 = vector.broadcast %219 : vector<1x16xf32> to vector<16x16xf32>
    %221 = arith.addf %217, %220 : vector<16x16xf32>
    %c3_147 = arith.constant 3 : index
    %c0_148 = arith.constant 0 : index
    %c0_149 = arith.constant 0 : index
    %222 = vector.load %arg8[%c3_147, %c0_148, %c0_149] : memref<4x32x16xf32, #tpu.memory_space<vmem>>, vector<1x32x16xf32>
    %223 = vector.shape_cast %222 : vector<1x32x16xf32> to vector<32x16xf32>
    %cst_150 = arith.constant dense<0.000000e+00> : vector<16x16xf32>
    %224 = tpu.matmul %169, %223, %cst_150 {dimension_numbers = #tpu.dot_dimension_numbers<[1], [0], [0], [1], [0, 0, 1, 1], [], []>} : vector<16x32xf32>, vector<32x16xf32>, vector<16x16xf32> -> vector<16x16xf32>
    %c3_151 = arith.constant 3 : index
    %c0_152 = arith.constant 0 : index
    %c0_153 = arith.constant 0 : index
    %225 = vector.load %arg9[%c3_151, %c0_152, %c0_153] : memref<4x1x16xf32, #tpu.memory_space<vmem>>, vector<1x1x16xf32>
    %226 = vector.shape_cast %225 : vector<1x1x16xf32> to vector<1x16xf32>
    %227 = vector.broadcast %226 : vector<1x16xf32> to vector<16x16xf32>
    %228 = arith.addf %224, %227 : vector<16x16xf32>
    "tpu.trace_start"() <{level = 10 : i32, message = "qk,mk->qm"}> : () -> ()
    %cst_154 = arith.constant dense<0.000000e+00> : vector<16x16xf32>
    %229 = tpu.matmul %214, %221, %cst_154 {dimension_numbers = #tpu.dot_dimension_numbers<[1], [1], [0], [0], [0, 0, 1, 0], [], []>} : vector<16x16xf32>, vector<16x16xf32>, vector<16x16xf32> -> vector<16x16xf32>
    %cst_155 = arith.constant -1.000000e+30 : f32
    "tpu.trace_stop"() : () -> ()
    %230 = vector.broadcast %cst_155 : f32 to vector<16x16xf32>
    %231 = arith.select %18, %229, %230 : vector<16x16xi1>, vector<16x16xf32>
    %cst_156 = arith.constant dense<0xFF800000> : vector<16xf32>
    %232 = vector.multi_reduction <maximumf>, %231, %cst_156 [1] : vector<16x16xf32> to vector<16xf32>
    %233 = vector.shape_cast %232 : vector<16xf32> to vector<16x1xf32>
    %234 = vector.broadcast %233 : vector<16x1xf32> to vector<16x16xf32>
    %235 = arith.subf %231, %234 : vector<16x16xf32>
    %236 = math.exp %235 : vector<16x16xf32>
    %cst_157 = arith.constant dense<0.000000e+00> : vector<16xf32>
    %237 = vector.multi_reduction <add>, %236, %cst_157 [1] : vector<16x16xf32> to vector<16xf32>
    %238 = vector.shape_cast %237 : vector<16xf32> to vector<16x1xf32>
    %239 = tpu.reciprocal %238 {approx = true} : vector<16x1xf32> -> vector<16x1xf32>
    %240 = vector.broadcast %239 : vector<16x1xf32> to vector<16x16xf32>
    %241 = arith.mulf %236, %240 : vector<16x16xf32>
    %cst_158 = arith.constant dense<0.000000e+00> : vector<16x16xf32>
    %242 = tpu.matmul %241, %228, %cst_158 {dimension_numbers = #tpu.dot_dimension_numbers<[1], [0], [0], [1], [0, 0, 1, 1], [], []>} : vector<16x16xf32>, vector<16x16xf32>, vector<16x16xf32> -> vector<16x16xf32>
    %c3_159 = arith.constant 3 : index
    %c0_160 = arith.constant 0 : index
    %c0_161 = arith.constant 0 : index
    %243 = vector.load %arg10[%c3_159, %c0_160, %c0_161] : memref<4x16x32xf32, #tpu.memory_space<vmem>>, vector<1x16x32xf32>
    %244 = vector.shape_cast %243 : vector<1x16x32xf32> to vector<16x32xf32>
    %cst_162 = arith.constant dense<0.000000e+00> : vector<16x32xf32>
    %245 = tpu.matmul %242, %244, %cst_162 {dimension_numbers = #tpu.dot_dimension_numbers<[1], [0], [0], [1], [0, 0, 1, 1], [], []>} : vector<16x16xf32>, vector<16x32xf32>, vector<16x32xf32> -> vector<16x32xf32>
    %246 = arith.addf %207, %245 : vector<16x32xf32>
    %c1_163 = arith.constant 1 : index
    %c0_164 = arith.constant 0 : index
    %c0_165 = arith.constant 0 : index
    %247 = vector.load %arg11[%c1_163, %c0_164, %c0_165] : memref<2x1x32xf32, #tpu.memory_space<vmem>>, vector<1x1x32xf32>
    %248 = vector.shape_cast %247 : vector<1x1x32xf32> to vector<1x32xf32>
    %249 = vector.broadcast %248 : vector<1x32xf32> to vector<16x32xf32>
    %250 = arith.addf %246, %249 : vector<16x32xf32>
    %251 = arith.addf %169, %250 : vector<16x32xf32>
    %c1_166 = arith.constant 1 : index
    %c0_167 = arith.constant 0 : index
    %c0_168 = arith.constant 0 : index
    %252 = vector.load %arg12[%c1_166, %c0_167, %c0_168] : memref<2x1x32xf32, #tpu.memory_space<vmem>>, vector<1x1x32xf32>
    %253 = vector.shape_cast %252 : vector<1x1x32xf32> to vector<1x32xf32>
    %c1_169 = arith.constant 1 : index
    %c0_170 = arith.constant 0 : index
    %c0_171 = arith.constant 0 : index
    %254 = vector.load %arg13[%c1_169, %c0_170, %c0_171] : memref<2x1x32xf32, #tpu.memory_space<vmem>>, vector<1x1x32xf32>
    %255 = vector.shape_cast %254 : vector<1x1x32xf32> to vector<1x32xf32>
    %cst_172 = arith.constant dense<0.000000e+00> : vector<16xf32>
    %256 = vector.multi_reduction <add>, %251, %cst_172 [1] : vector<16x32xf32> to vector<16xf32>
    %257 = vector.shape_cast %256 : vector<16xf32> to vector<16x1xf32>
    %cst_173 = arith.constant 3.200000e+01 : f32
    %258 = vector.broadcast %cst_173 : f32 to vector<16x1xf32>
    %259 = arith.divf %257, %258 : vector<16x1xf32>
    %260 = vector.broadcast %259 : vector<16x1xf32> to vector<16x32xf32>
    %261 = arith.subf %251, %260 : vector<16x32xf32>
    %262 = arith.mulf %261, %261 : vector<16x32xf32>
    %cst_174 = arith.constant dense<0.000000e+00> : vector<16xf32>
    %263 = vector.multi_reduction <add>, %262, %cst_174 [1] : vector<16x32xf32> to vector<16xf32>
    %264 = vector.shape_cast %263 : vector<16xf32> to vector<16x1xf32>
    %cst_175 = arith.constant 3.200000e+01 : f32
    %265 = vector.broadcast %cst_175 : f32 to vector<16x1xf32>
    %266 = arith.divf %264, %265 : vector<16x1xf32>
    %267 = vector.broadcast %259 : vector<16x1xf32> to vector<16x32xf32>
    %268 = arith.subf %251, %267 : vector<16x32xf32>
    %cst_176 = arith.constant 9.99999974E-6 : f32
    %269 = vector.broadcast %cst_176 : f32 to vector<16x1xf32>
    %270 = arith.addf %266, %269 : vector<16x1xf32>
    %271 = math.rsqrt %270 : vector<16x1xf32>
    %272 = vector.broadcast %271 : vector<16x1xf32> to vector<16x32xf32>
    %273 = arith.mulf %268, %272 : vector<16x32xf32>
    %274 = vector.broadcast %253 : vector<1x32xf32> to vector<16x32xf32>
    %275 = arith.mulf %273, %274 : vector<16x32xf32>
    %276 = vector.broadcast %255 : vector<1x32xf32> to vector<16x32xf32>
    %277 = arith.addf %275, %276 : vector<16x32xf32>
    %c1_177 = arith.constant 1 : index
    %c0_178 = arith.constant 0 : index
    %c0_179 = arith.constant 0 : index
    %278 = vector.load %arg14[%c1_177, %c0_178, %c0_179] : memref<2x32x64xf32, #tpu.memory_space<vmem>>, vector<1x32x64xf32>
    %279 = vector.shape_cast %278 : vector<1x32x64xf32> to vector<32x64xf32>
    %cst_180 = arith.constant dense<0.000000e+00> : vector<16x64xf32>
    %280 = tpu.matmul %277, %279, %cst_180 {dimension_numbers = #tpu.dot_dimension_numbers<[1], [0], [0], [1], [0, 0, 1, 1], [], []>} : vector<16x32xf32>, vector<32x64xf32>, vector<16x64xf32> -> vector<16x64xf32>
    %c1_181 = arith.constant 1 : index
    %c0_182 = arith.constant 0 : index
    %c0_183 = arith.constant 0 : index
    %281 = vector.load %arg15[%c1_181, %c0_182, %c0_183] : memref<2x1x64xf32, #tpu.memory_space<vmem>>, vector<1x1x64xf32>
    %282 = vector.shape_cast %281 : vector<1x1x64xf32> to vector<1x64xf32>
    %283 = vector.broadcast %282 : vector<1x64xf32> to vector<16x64xf32>
    %284 = arith.addf %280, %283 : vector<16x64xf32>
    %cst_184 = arith.constant 0.000000e+00 : f32
    %285 = vector.broadcast %cst_184 : f32 to vector<16x64xf32>
    %286 = arith.maximumf %284, %285 : vector<16x64xf32>
    %c1_185 = arith.constant 1 : index
    %c0_186 = arith.constant 0 : index
    %c0_187 = arith.constant 0 : index
    %287 = vector.load %arg16[%c1_185, %c0_186, %c0_187] : memref<2x64x32xf32, #tpu.memory_space<vmem>>, vector<1x64x32xf32>
    %288 = vector.shape_cast %287 : vector<1x64x32xf32> to vector<64x32xf32>
    %cst_188 = arith.constant dense<0.000000e+00> : vector<16x32xf32>
    %289 = tpu.matmul %286, %288, %cst_188 {dimension_numbers = #tpu.dot_dimension_numbers<[1], [0], [0], [1], [0, 0, 1, 1], [], []>} : vector<16x64xf32>, vector<64x32xf32>, vector<16x32xf32> -> vector<16x32xf32>
    %c1_189 = arith.constant 1 : index
    %c0_190 = arith.constant 0 : index
    %c0_191 = arith.constant 0 : index
    %290 = vector.load %arg17[%c1_189, %c0_190, %c0_191] : memref<2x1x32xf32, #tpu.memory_space<vmem>>, vector<1x1x32xf32>
    %291 = vector.shape_cast %290 : vector<1x1x32xf32> to vector<1x32xf32>
    %292 = vector.broadcast %291 : vector<1x32xf32> to vector<16x32xf32>
    %293 = arith.addf %289, %292 : vector<16x32xf32>
    %294 = arith.addf %277, %293 : vector<16x32xf32>
    %c1_192 = arith.constant 1 : index
    %c0_193 = arith.constant 0 : index
    %c0_194 = arith.constant 0 : index
    %295 = vector.load %arg18[%c1_192, %c0_193, %c0_194] : memref<2x1x32xf32, #tpu.memory_space<vmem>>, vector<1x1x32xf32>
    %296 = vector.shape_cast %295 : vector<1x1x32xf32> to vector<1x32xf32>
    %c1_195 = arith.constant 1 : index
    %c0_196 = arith.constant 0 : index
    %c0_197 = arith.constant 0 : index
    %297 = vector.load %arg19[%c1_195, %c0_196, %c0_197] : memref<2x1x32xf32, #tpu.memory_space<vmem>>, vector<1x1x32xf32>
    %298 = vector.shape_cast %297 : vector<1x1x32xf32> to vector<1x32xf32>
    %cst_198 = arith.constant dense<0.000000e+00> : vector<16xf32>
    %299 = vector.multi_reduction <add>, %294, %cst_198 [1] : vector<16x32xf32> to vector<16xf32>
    %300 = vector.shape_cast %299 : vector<16xf32> to vector<16x1xf32>
    %cst_199 = arith.constant 3.200000e+01 : f32
    %301 = vector.broadcast %cst_199 : f32 to vector<16x1xf32>
    %302 = arith.divf %300, %301 : vector<16x1xf32>
    %303 = vector.broadcast %302 : vector<16x1xf32> to vector<16x32xf32>
    %304 = arith.subf %294, %303 : vector<16x32xf32>
    %305 = arith.mulf %304, %304 : vector<16x32xf32>
    %cst_200 = arith.constant dense<0.000000e+00> : vector<16xf32>
    %306 = vector.multi_reduction <add>, %305, %cst_200 [1] : vector<16x32xf32> to vector<16xf32>
    %307 = vector.shape_cast %306 : vector<16xf32> to vector<16x1xf32>
    %cst_201 = arith.constant 3.200000e+01 : f32
    %308 = vector.broadcast %cst_201 : f32 to vector<16x1xf32>
    %309 = arith.divf %307, %308 : vector<16x1xf32>
    %310 = vector.broadcast %302 : vector<16x1xf32> to vector<16x32xf32>
    %311 = arith.subf %294, %310 : vector<16x32xf32>
    %cst_202 = arith.constant 9.99999974E-6 : f32
    %312 = vector.broadcast %cst_202 : f32 to vector<16x1xf32>
    %313 = arith.addf %309, %312 : vector<16x1xf32>
    %314 = math.rsqrt %313 : vector<16x1xf32>
    %315 = vector.broadcast %314 : vector<16x1xf32> to vector<16x32xf32>
    %316 = arith.mulf %311, %315 : vector<16x32xf32>
    %317 = vector.broadcast %296 : vector<1x32xf32> to vector<16x32xf32>
    %318 = arith.mulf %316, %317 : vector<16x32xf32>
    %319 = vector.broadcast %298 : vector<1x32xf32> to vector<16x32xf32>
    %320 = arith.addf %318, %319 : vector<16x32xf32>
    %c0_203 = arith.constant 0 : index
    %c0_204 = arith.constant 0 : index
    %321 = vector.load %arg20[%c0_203, %c0_204] : memref<32x128xf32, #tpu.memory_space<vmem>>, vector<32x128xf32>
    %cst_205 = arith.constant dense<0.000000e+00> : vector<16x128xf32>
    %322 = tpu.matmul %320, %321, %cst_205 {dimension_numbers = #tpu.dot_dimension_numbers<[1], [0], [0], [1], [0, 0, 1, 1], [], []>} : vector<16x32xf32>, vector<32x128xf32>, vector<16x128xf32> -> vector<16x128xf32>
    %c0_206 = arith.constant 0 : index
    %c0_207 = arith.constant 0 : index
    %323 = vector.load %arg21[%c0_206, %c0_207] : memref<1x128xf32, #tpu.memory_space<vmem>>, vector<1x128xf32>
    %324 = vector.broadcast %323 : vector<1x128xf32> to vector<16x128xf32>
    %325 = arith.addf %322, %324 : vector<16x128xf32>
    %c0_208 = arith.constant 0 : index
    %c0_209 = arith.constant 0 : index
    %326 = vector.load %arg22[%c0_208, %c0_209] : memref<16x128xf32, #tpu.memory_space<vmem>>, vector<16x128xf32>
    tpu.vector_store %arg22[%c0_208, %c0_209], %325 {strides = array<i32>} : memref<16x128xf32, #tpu.memory_space<vmem>>, vector<16x128xf32>,
    return
  }
  func.func @transform_0(%arg0: i32) -> (i32, i32) {
    %c0_i32 = arith.constant 0 : i32
    %c0_i32_0 = arith.constant 0 : i32
    %c0_i32_1 = arith.constant 0 : i32
    return %c0_i32, %c0_i32_0 : i32, i32
  }
  func.func @transform_1(%arg0: i32) -> (i32, i32) {
    %c0_i32 = arith.constant 0 : i32
    %c0_i32_0 = arith.constant 0 : i32
    %c0_i32_1 = arith.constant 0 : i32
    return %c0_i32, %c0_i32_0 : i32, i32
  }
  func.func @transform_2(%arg0: i32) -> (i32, i32) {
    %c0_i32 = arith.constant 0 : i32
    %c0_i32_0 = arith.constant 0 : i32
    %c0_i32_1 = arith.constant 0 : i32
    return %c0_i32, %c0_i32_0 : i32, i32
  }
  func.func @transform_3(%arg0: i32) -> (i32, i32, i32) {
    %c0_i32 = arith.constant 0 : i32
    %c0_i32_0 = arith.constant 0 : i32
    %c0_i32_1 = arith.constant 0 : i32
    %c0_i32_2 = arith.constant 0 : i32
    return %c0_i32, %c0_i32_0, %c0_i32_1 : i32, i32, i32
  }
  func.func @transform_4(%arg0: i32) -> (i32, i32, i32) {
    %c0_i32 = arith.constant 0 : i32
    %c0_i32_0 = arith.constant 0 : i32
    %c0_i32_1 = arith.constant 0 : i32
    %c0_i32_2 = arith.constant 0 : i32
    return %c0_i32, %c0_i32_0, %c0_i32_1 : i32, i32, i32
  }
  func.func @transform_5(%arg0: i32) -> (i32, i32, i32) {
    %c0_i32 = arith.constant 0 : i32
    %c0_i32_0 = arith.constant 0 : i32
    %c0_i32_1 = arith.constant 0 : i32
    %c0_i32_2 = arith.constant 0 : i32
    return %c0_i32, %c0_i32_0, %c0_i32_1 : i32, i32, i32
  }
  func.func @transform_6(%arg0: i32) -> (i32, i32, i32) {
    %c0_i32 = arith.constant 0 : i32
    %c0_i32_0 = arith.constant 0 : i32
    %c0_i32_1 = arith.constant 0 : i32
    %c0_i32_2 = arith.constant 0 : i32
    return %c0_i32, %c0_i32_0, %c0_i32_1 : i32, i32, i32
  }
  func.func @transform_7(%arg0: i32) -> (i32, i32, i32) {
    %c0_i32 = arith.constant 0 : i32
    %c0_i32_0 = arith.constant 0 : i32
    %c0_i32_1 = arith.constant 0 : i32
    %c0_i32_2 = arith.constant 0 : i32
    return %c0_i32, %c0_i32_0, %c0_i32_1 : i32, i32, i32
  }
  func.func @transform_8(%arg0: i32) -> (i32, i32, i32) {
    %c0_i32 = arith.constant 0 : i32
    %c0_i32_0 = arith.constant 0 : i32
    %c0_i32_1 = arith.constant 0 : i32
    %c0_i32_2 = arith.constant 0 : i32
    return %c0_i32, %c0_i32_0, %c0_i32_1 : i32, i32, i32
  }
  func.func @transform_9(%arg0: i32) -> (i32, i32, i32) {
    %c0_i32 = arith.constant 0 : i32
    %c0_i32_0 = arith.constant 0 : i32
    %c0_i32_1 = arith.constant 0 : i32
    %c0_i32_2 = arith.constant 0 : i32
    return %c0_i32, %c0_i32_0, %c0_i32_1 : i32, i32, i32
  }
  func.func @transform_10(%arg0: i32) -> (i32, i32, i32) {
    %c0_i32 = arith.constant 0 : i32
    %c0_i32_0 = arith.constant 0 : i32
    %c0_i32_1 = arith.constant 0 : i32
    %c0_i32_2 = arith.constant 0 : i32
    return %c0_i32, %c0_i32_0, %c0_i32_1 : i32, i32, i32
  }
  func.func @transform_11(%arg0: i32) -> (i32, i32, i32) {
    %c0_i32 = arith.constant 0 : i32
    %c0_i32_0 = arith.constant 0 : i32
    %c0_i32_1 = arith.constant 0 : i32
    %c0_i32_2 = arith.constant 0 : i32
    return %c0_i32, %c0_i32_0, %c0_i32_1 : i32, i32, i32
  }
  func.func @transform_12(%arg0: i32) -> (i32, i32, i32) {
    %c0_i32 = arith.constant 0 : i32
    %c0_i32_0 = arith.constant 0 : i32
    %c0_i32_1 = arith.constant 0 : i32
    %c0_i32_2 = arith.constant 0 : i32
    return %c0_i32, %c0_i32_0, %c0_i32_1 : i32, i32, i32
  }
  func.func @transform_13(%arg0: i32) -> (i32, i32, i32) {
    %c0_i32 = arith.constant 0 : i32
    %c0_i32_0 = arith.constant 0 : i32
    %c0_i32_1 = arith.constant 0 : i32
    %c0_i32_2 = arith.constant 0 : i32
    return %c0_i32, %c0_i32_0, %c0_i32_1 : i32, i32, i32
  }
  func.func @transform_14(%arg0: i32) -> (i32, i32, i32) {
    %c0_i32 = arith.constant 0 : i32
    %c0_i32_0 = arith.constant 0 : i32
    %c0_i32_1 = arith.constant 0 : i32
    %c0_i32_2 = arith.constant 0 : i32
    return %c0_i32, %c0_i32_0, %c0_i32_1 : i32, i32, i32
  }
  func.func @transform_15(%arg0: i32) -> (i32, i32, i32) {
    %c0_i32 = arith.constant 0 : i32
    %c0_i32_0 = arith.constant 0 : i32
    %c0_i32_1 = arith.constant 0 : i32
    %c0_i32_2 = arith.constant 0 : i32
    return %c0_i32, %c0_i32_0, %c0_i32_1 : i32, i32, i32
  }
  func.func @transform_16(%arg0: i32) -> (i32, i32, i32) {
    %c0_i32 = arith.constant 0 : i32
    %c0_i32_0 = arith.constant 0 : i32
    %c0_i32_1 = arith.constant 0 : i32
    %c0_i32_2 = arith.constant 0 : i32
    return %c0_i32, %c0_i32_0, %c0_i32_1 : i32, i32, i32
  }
  func.func @transform_17(%arg0: i32) -> (i32, i32, i32) {
    %c0_i32 = arith.constant 0 : i32
    %c0_i32_0 = arith.constant 0 : i32
    %c0_i32_1 = arith.constant 0 : i32
    %c0_i32_2 = arith.constant 0 : i32
    return %c0_i32, %c0_i32_0, %c0_i32_1 : i32, i32, i32
  }
  func.func @transform_18(%arg0: i32) -> (i32, i32, i32) {
    %c0_i32 = arith.constant 0 : i32
    %c0_i32_0 = arith.constant 0 : i32
    %c0_i32_1 = arith.constant 0 : i32
    %c0_i32_2 = arith.constant 0 : i32
    return %c0_i32, %c0_i32_0, %c0_i32_1 : i32, i32, i32
  }
  func.func @transform_19(%arg0: i32) -> (i32, i32) {
    %c0_i32 = arith.constant 0 : i32
    %c0_i32_0 = arith.constant 0 : i32
    %c0_i32_1 = arith.constant 0 : i32
    return %c0_i32, %c0_i32_0 : i32, i32
  }
  func.func @transform_20(%arg0: i32) -> (i32, i32) {
    %c0_i32 = arith.constant 0 : i32
    %c0_i32_0 = arith.constant 0 : i32
    %c0_i32_1 = arith.constant 0 : i32
    return %c0_i32, %c0_i32_0 : i32, i32
  }
  func.func @transform_21(%arg0: i32) -> (i32, i32) {
    %c0_i32 = arith.constant 0 : i32
    %c0_i32_0 = arith.constant 0 : i32
    %c0_i32_1 = arith.constant 0 : i32
    return %c0_i32, %c0_i32_0 : i32, i32
  }
}

</mosaic_0001>

<bundles_post_ra>
// kernel: transformer_lm_forward.1
= control target key start
LH: loop header
LB: loop body
LE: loop exit
PB: predicated region body
PF: predicated region fallthrough
CT: control target
= control target key end

     0   :  { %v3721_v0 = vmov 0   ;;  %v70_v10 = vlaneseq  ;;  %vm90_vm0 = vcmask 261120   ;;  %v3722_v13 = vmov 0.0   ;;  %s4373_s0 = inlined_call_operand.vmem [shape: s32[16,1], index: 0, kind: input, shape index: {}]   ;;  %s4374_s1 = inlined_call_operand.vmem [shape: f32[32,32], index: 1, kind: input, shape index: {}]   ;;  %s4375_s3 = inlined_call_operand.vmem [shape: f32[4,32,16], index: 3, kind: input, shape index: {}]   ;;  %s4376_s5 = inlined_call_operand.vmem [shape: f32[4,32,16], index: 5, kind: input, shape index: {}]   ;;  %s4377_s7 = inlined_call_operand.vmem [shape: f32[4,32,16], index: 7, kind: input, shape index: {}]   ;;  %s4378_s2 = inlined_call_operand.vmem [shape: f32[16,32], index: 2, kind: input, shape index: {}]   ;;  %s4379_s6 = inlined_call_operand.vmem [shape: f32[4,1,16], index: 6, kind: input, shape index: {}]   ;;  %s4380_s4 = inlined_call_operand.vmem [shape: f32[4,1,16], index: 4, kind: input, shape index: {}]   ;;  %s4381_s8 = inlined_call_operand.vmem [shape: f32[4,1,16], index: 8, kind: input, shape index: {}]   ;;  %s4382_s9 = inlined_call_operand.vmem [shape: f32[4,16,32], index: 9, kind: input, shape index: {}]   ;;  %s4383_s10 = inlined_call_operand.vmem [shape: f32[2,1,32], index: 10, kind: input, shape index: {}]   ;;  %s4384_s13 = inlined_call_operand.vmem [shape: f32[2,32,64], index: 13, kind: input, shape index: {}]   ;;  %s4385_s15 = inlined_call_operand.vmem [shape: f32[2,64,32], index: 15, kind: input, shape index: {}]   ;;  %s4386_s11 = inlined_call_operand.vmem [shape: f32[2,1,32], index: 11, kind: input, shape index: {}]   ;;  %s4387_s12 = inlined_call_operand.vmem [shape: f32[2,1,32], index: 12, kind: input, shape index: {}]   ;;  %s4388_s14 = inlined_call_operand.vmem [shape: f32[2,1,64], index: 14, kind: input, shape index: {}]   ;;  %s4389_s16 = inlined_call_operand.vmem [shape: f32[2,1,32], index: 16, kind: input, shape index: {}]   ;;  %s4390_s17 = inlined_call_operand.vmem [shape: f32[2,1,32], index: 17, kind: input, shape index: {}]   ;;  %s4391_s18 = inlined_call_operand.vmem [shape: f32[2,1,32], index: 18, kind: input, shape index: {}]   ;;  %s4392_s19 = inlined_call_operand.vmem [shape: f32[32,128], index: 19, kind: input, shape index: {}]   ;;  %s4393_s20 = inlined_call_operand.vmem [shape: f32[1,128], index: 20, kind: input, shape index: {}]   ;;  %s4394_s21 = inlined_call_operand.vmem [shape: f32[16,128], index: 21, kind: output, shape index: {}]  }
   0x1   :  { %4401 = sst [smem:[#allocation2_spill]] %s4373_s0  ;;  %3672 = vset.pattern.permute.xlu0 %v3721_v0  ;;  %v3048_v32 = vld [vmem:[%s4379_s6] ss:$0 sm:$0xff]  ;;  %vm448_vm3 = vcmask 130048   ;;  %v3073_v63 = vld [vmem:[%s4379_s6 + $0x1] ss:$0 sm:$0xff] }
   0x2   :  { %4402 = sst [smem:[#allocation3_spill]] %s4374_s1  ;;  %v3861_v11 = vand.u32 127, %v70_v10  ;;  %v3045_v36 = vld [vmem:[%s4380_s4] ss:$0 sm:$0xff]  ;;  %v173_v51 = vshrl.u32 %v70_v10, 7  ;;  %vm1429_vm10 = vcmask 523264  }
   0x3   :  { %4403 = sst [smem:[#allocation4_spill]] %s4375_s3  ;;  %v3051_v41 = vld [vmem:[%s4381_s8] ss:$0 sm:$0xff] }
   0x4   :  { %4404 = sst [smem:[#allocation5_spill]] %s4376_s5  ;;  %v174_v52 = vadd.s32 8, %v173_v51  ;;  %v175_v53 = vshra.s32 %v173_v51, 3  ;;  %v177_v55 = vshra.s32 %v3861_v11, 3  ;;  %vm180_vm5 = vcmp.le.s32.totalorder %v3861_v11, %v173_v51 }
   0x5   :  { %4405 = sst [smem:[#allocation6_spill]] %s4377_s7 }
   0x6   :  { %4406 = sst [smem:[#allocation7_spill]] %s4378_s2  ;;  %v176_v54 = vshra.s32 %v174_v52, 3  ;;  %vm178_vm4 = vcmp.eq.s32.totalorder %v175_v53, %v177_v55  ;;  %vm181_vm7 = vcmp.le.s32.totalorder %v3861_v11, %v174_v52 }
   0x7   :  { %s4407_s26 = sld [smem:[#allocation2_spill]]  ;;  %vm3951_vm8 = vmand %vm178_vm4, %vm180_vm5 }
   0x8   :  { %s4408_s28 = sld [smem:[#allocation3_spill]]  ;;  %vm179_vm6 = vcmp.eq.s32.totalorder %v176_v54, %v177_v55 }
   0x9   :  { %s4409_s25 = sld [smem:[#allocation4_spill]]  ;;  %vm3955_vm9 = vmand %vm179_vm6, %vm181_vm7 }
   0xa   :  { %s4410_s0 = sld [smem:[#allocation5_spill]] }
   0xb   :  { %s4411_s29 = sld [smem:[#allocation6_spill]] }
   0xc   :  { %s4412_s30 = sld [smem:[#allocation7_spill]] }
   0xd   :  { %v68_v1 = vld [vmem:[%s4407_s26] sm:$0xff]  ;;  %v69_v4 = vld [vmem:[%s4407_s26 + $0x8] sm:$0xff] }
   0xe   :  { %v87_v2 = vld [vmem:[%s4408_s28 + $0x18] sm:$0xff]  ;;  %73 = vperm.xlu0 %3672, %v68_v1   ;;  %v86_v3 = vld [vmem:[%s4408_s28 + $0x10] sm:$0xff]  ;;  %v85_v5 = vld [vmem:[%s4408_s28 + $0x8] sm:$0xff] }
   0xf   :  { %3372 = vmatprep.subr.mxu0 %v87_v2  ;;  %v84_v6 = vld [vmem:[%s4408_s28] sm:$0xff]  ;;  %v187_v7 = vld [vmem:[%s4409_s25 + $0x18] sm:$0xff]  ;;  %v186_v8 = vld [vmem:[%s4409_s25 + $0x10] sm:$0xff] }
  0x10   :  { %3373 = vmatpush3.msra.mxu0 %v87_v2  ;;  %3383 = vmatprep.subr.mxu1 %v187_v7  ;;  %v279_v9 = vld [vmem:[%s4410_s0 + $0x18] sm:$0xff]  ;;  %v278_v17 = vld [vmem:[%s4410_s0 + $0x10] sm:$0xff]  ;;  %v185_v18 = vld [vmem:[%s4409_s25 + $0x8] sm:$0xff] }
  0x11   :  { %3374 = vmatprep.subr.mxu0 %v86_v3  ;;  %3384 = vmatpush3.msra.mxu1 %v187_v7  ;;  %v277_v19 = vld [vmem:[%s4410_s0 + $0x8] sm:$0xff]  ;;  %v184_v20 = vld [vmem:[%s4409_s25] sm:$0xff]  ;;  %v365_v22 = vld [vmem:[%s4411_s29 + $0x18] sm:$0xff] }
  0x12   :  { %3375 = vmatpush3.msra.mxu0 %v86_v3  ;;  %76 = vperm.xlu0 %3672, %v69_v4   ;;  %v276_v21 = vld [vmem:[%s4410_s0] sm:$0xff]  ;;  %v89_v25 = vld [vmem:[%s4412_s30 + $0x8] sm:$0xff]  ;;  %v364_v29 = vld [vmem:[%s4411_s29 + $0x10] sm:$0xff] }
  0x13   :  { %3376 = vmatprep.subr.mxu0 %v85_v5  ;;  %3385 = vmatprep.subr.mxu1 %v186_v8  ;;  %v88_v24 = vld [vmem:[%s4412_s30] sm:$0xff]  ;;  %v363_v30 = vld [vmem:[%s4411_s29 + $0x8] sm:$0xff]  ;;  %v3071_v42 = vld [vmem:[%s4410_s0 + $0x38] sm:$0xff] }
  0x14   :  { %3377 = vmatpush3.msra.mxu0 %v85_v5  ;;  %3386 = vmatpush3.msra.mxu1 %v186_v8  ;;  %v362_v31 = vld [vmem:[%s4411_s29] sm:$0xff]  ;;  %v3070_v48 = vld [vmem:[%s4410_s0 + $0x30] sm:$0xff]  ;;  %v3069_v49 = vld [vmem:[%s4410_s0 + $0x28] sm:$0xff] }
  0x15   :  { %3378 = vmatprep.subr.mxu0 %v84_v6  ;;  %3387 = vmatprep.subr.mxu1 %v185_v18  ;;  %v3068_v50 = vld [vmem:[%s4410_s0 + $0x20] sm:$0xff] }
  0x16   :  { %3379 = vmatpush3.msra.mxu0 %v84_v6  ;;  %3388 = vmatpush3.msra.mxu1 %v185_v18 }
  0x17   :  { %3394 = vmatprep.subr.mxu0 %v279_v9  ;;  %3389 = vmatprep.subr.mxu1 %v184_v20 }
  0x18   :  { %3390 = vmatpush3.msra.mxu1 %v184_v20 }
  0x19   :  { %3405 = vmatprep.subr.mxu1 %v365_v22 }
  0x89   :  { %v74_v12 = vpop.permute.xlu0 %73 }
  0x8a   :  { %vm78_vm1 = vcmp.eq.s32.totalorder %v3861_v11, %v74_v12 }
  0x8b   :  { %v3041_v14 = vsel %vm78_vm1, 1.0, %v3722_v13 }
  0x8c   :  { %3380 = vmatprep.mubr.msk.f32.mxu0 %vm90_vm0, %v3041_v14 }
  0x8d   :  { %v77_v15 = vpop.permute.xlu0 %76 }
  0x8e   :  { %vm79_vm2 = vcmp.eq.s32.totalorder %v3861_v11, %v77_v15  ;;  %v3063_v15 = vld [vmem:[%s4409_s25 + $0x38] sm:$0xff] }
  0x8f   :  { %v3042_v16 = vsel %vm79_vm2, 1.0, %v3722_v13 }
  0x90   :  { %3381 = vmatmul.mubr.msk.f32.vlgmr.msra.gmra.mxu0 %vm90_vm0, %v3042_v16 }
  0x91   :  { %3395 = vmatpush3.msra.mxu0 %v279_v9 }
  0x92   :  { %3396 = vmatprep.subr.mxu0 %v278_v17 }
  0x93   :  { %3397 = vmatpush3.msra.mxu0 %v278_v17 }
  0x94   :  { %3398 = vmatprep.subr.mxu0 %v277_v19 }
  0x95   :  { %3399 = vmatpush3.msra.mxu0 %v277_v19 }
  0x96   :  { %3400 = vmatprep.subr.mxu0 %v276_v21 }
  0x97   :  { %3401 = vmatpush3.msra.mxu0 %v276_v21 }
 0x150   :  { %v3382_v23 = vpop.f32.mrf.mxu0 }
 0x151   :  { %v3893_v28 = vadd.f32 %v3382_v23, %v89_v25  ;;  %v3061_v23 = vld [vmem:[%s4409_s25 + $0x28] sm:$0xff]  ;;  %v3079_v25 = vld [vmem:[%s4411_s29 + $0x38] sm:$0xff] }
 0x152   :  { %v163_v26 = vpop.f32.mrf.mxu0 }
 0x153   :  { %v3891_v27 = vadd.f32 %v163_v26, %v88_v24  ;;  %v3060_v24 = vld [vmem:[%s4409_s25 + $0x20] sm:$0xff]  ;;  %v3078_v26 = vld [vmem:[%s4411_s29 + $0x30] sm:$0xff] }
 0x155   :  { %3391 = vmatprep.mubr.msk.f32.mxu1 %vm90_vm0, %v3891_v27  ;;  %3402 = vmatprep.mubr.msk.f32.mxu0 %vm90_vm0, %v3891_v27 }
 0x156   :  { %3392 = vmatmul.mubr.msk.f32.vlgmr.msra.gmra.mxu1 %vm90_vm0, %v3893_v28  ;;  %3403 = vmatmul.mubr.msk.f32.vlgmr.msra.gmra.mxu0 %vm90_vm0, %v3893_v28 }
 0x157   :  { %3406 = vmatpush3.msra.mxu1 %v365_v22  ;;  %3413 = vmatprep.mubr.msk.f32.mxu1 %vm90_vm0, %v3891_v27  ;;  %v3062_v22 = vld [vmem:[%s4409_s25 + $0x30] sm:$0xff] }
 0x158   :  { %3407 = vmatprep.subr.mxu1 %v364_v29 }
 0x159   :  { %3408 = vmatpush3.msra.mxu1 %v364_v29  ;;  %v3077_v29 = vld [vmem:[%s4411_s29 + $0x28] sm:$0xff] }
 0x15a   :  { %3409 = vmatprep.subr.mxu1 %v363_v30 }
 0x15b   :  { %3410 = vmatpush3.msra.mxu1 %v363_v30  ;;  %v3076_v30 = vld [vmem:[%s4411_s29 + $0x20] sm:$0xff] }
 0x15c   :  { %3411 = vmatprep.subr.mxu1 %v362_v31 }
 0x15d   :  { %3412 = vmatpush3.msra.mxu1 %v362_v31 }
 0x15e   :  { %3414 = vmatmul.mubr.msk.f32.vlgmr.msra.gmra.mxu1 %vm90_vm0, %v3893_v28 }
 0x216   :  { %v3393_v33 = vpop.f32.mrf.mxu1  ;;  %v3404_v34 = vpop.f32.mrf.mxu0 }
 0x217   :  { %v359_v35 = vadd.f32 %v3404_v34, %v3048_v32  ;;  %v273_v44 = vadd.f32 %v3393_v33, %v3045_v36  ;;  %v3065_v34 = vld [vmem:[%s4380_s4 + $0x1] ss:$0 sm:$0xff] }
 0x218   :  { %v267_v37 = vpop.f32.mrf.mxu1  ;;  %v353_v38 = vpop.f32.mrf.mxu0 }
 0x219   :  { %v268_v39 = vadd.f32 %v3045_v36, %v267_v37  ;;  %v354_v40 = vadd.f32 %v3048_v32, %v353_v38  ;;  %3416 = vmatprep.subr.msk.mxu0 %vm448_vm3, %v359_v35  ;;  %v3081_v38 = vld [vmem:[%s4381_s8 + $0x1] ss:$0 sm:$0xff] }
 0x21a   :  { %3417 = vmatpush3.xpose.msk.msra.mxu0 %vm448_vm3, %v359_v35 }
 0x21b   :  { %3418 = vmatprep.subr.msk.mxu0 %vm448_vm3, %v354_v40  ;;  %3420 = vmatprep.mubr.msk.f32.mxu0 %vm448_vm3, %v268_v39 }
 0x21e   :  { %v3415_v43 = vpop.f32.mrf.mxu1  ;;  %3419 = vmatpush3.xpose.msk.msra.mxu0 %vm448_vm3, %v354_v40 }
 0x21f   :  { %v445_v45 = vadd.f32 %v3415_v43, %v3051_v41  ;;  %3441 = vmatprep.subr.mxu0 %v3071_v42 }
 0x220   :  { %v439_v46 = vpop.f32.mrf.mxu1 }
 0x221   :  { %v440_v47 = vadd.f32 %v3051_v41, %v439_v46  ;;  %3423 = vmatprep.subr.mxu1 %v445_v45  ;;  %3421 = vmatmul.mubr.msk.f32.vlgmr.msra.gmra.mxu0 %vm448_vm3, %v273_v44 }
 0x222   :  { %3424 = vmatpush3.msra.mxu1 %v445_v45  ;;  %3442 = vmatpush3.msra.mxu0 %v3071_v42 }
 0x223   :  { %3425 = vmatprep.subr.mxu1 %v440_v47  ;;  %3449 = vmatprep.mubr.msk.f32.mxu0 %vm90_vm0, %v3891_v27 }
 0x224   :  { %3426 = vmatpush3.msra.mxu1 %v440_v47  ;;  %3443 = vmatprep.subr.mxu0 %v3070_v48 }
 0x225   :  { %3444 = vmatpush3.msra.mxu0 %v3070_v48  ;;  %3430 = vmatprep.subr.mxu1 %v3063_v15 }
 0x226   :  { %3445 = vmatprep.subr.mxu0 %v3069_v49 }
 0x227   :  { %3446 = vmatpush3.msra.mxu0 %v3069_v49 }
 0x228   :  { %3447 = vmatprep.subr.mxu0 %v3068_v50 }
 0x229   :  { %3448 = vmatpush3.msra.mxu0 %v3068_v50 }
 0x22a   :  { %3450 = vmatmul.mubr.msk.f32.vlgmr.msra.gmra.mxu0 %vm90_vm0, %v3893_v28 }
 0x2e1   :  { %v3422_v56 = vpop.f32.mrf.mxu0 }
 0x2e2   :  { %v537_v62 = vsel %vm3955_vm9, %v3422_v56, -1e+30 }
 0x2e3   :  { %v527_v59 = vpop.f32.mrf.mxu0  ;;  %v541_v0 = vsel %vm448_vm3, %v537_v62, -inf }
 0x2e4   :  { %v536_v60 = vsel %vm3951_vm8, %v527_v59, -1e+30 }
 0x2e5   :  { %v538_v61 = vsel %vm448_vm3, %v536_v60, -inf }
 0x2e6   :  { %539 = vmax.xlane.f32.xlu1 %v538_v61  ;;  %v642_v61 = vld [vmem:[%s4382_s9 + $0x8] sm:$0xff] }
 0x2ea   :  { %v3451_v1 = vpop.f32.mrf.mxu0  ;;  %542 = vmax.xlane.f32.xlu1 %v541_v0 }
 0x2eb   :  { %v816_v2 = vadd.f32 %v3451_v1, %v3073_v63 }
 0x2ec   :  { %v810_v3 = vpop.f32.mrf.mxu0 }
 0x2ed   :  { %v811_v4 = vadd.f32 %v3073_v63, %v810_v3  ;;  %3463 = vmatprep.subr.msk.mxu0 %vm448_vm3, %v816_v2 }
 0x2ee   :  { %3464 = vmatpush3.xpose.msk.msra.mxu0 %vm448_vm3, %v816_v2 }
 0x2ef   :  { %3465 = vmatprep.subr.msk.mxu0 %vm448_vm3, %v811_v4 }
 0x2f2   :  { %3466 = vmatpush3.xpose.msk.msra.mxu0 %vm448_vm3, %v811_v4 }
 0x36f   :  { %v540_v5 = vpop.xlane.xlu1 %539 }
 0x370   :  { %v544_v6 = vsub.f32 %v536_v60, %v540_v5  ;;  %v641_v5 = vld [vmem:[%s4382_s9] sm:$0xff] }
 0x372   :  { %v546_v7 = vmul.f32 1.442695, %v544_v6  ;;  %v3090_v6 = vld [vmem:[%s4382_s9 + $0x10] sm:$0xff] }
 0x373   :  { %v543_v8 = vpop.xlane.xlu1 %542 }
 0x374   :  { %3673 = vpow2.f32 %v546_v7  ;;  %v545_v9 = vsub.f32 %v537_v62, %v543_v8  ;;  %v3091_v62 = vld [vmem:[%s4382_s9 + $0x18] sm:$0xff] }
 0x375   :  { %3477 = vmatprep.subr.mxu0 %v3091_v62 }
 0x376   :  { %v548_v10 = vmul.f32 1.442695, %v545_v9 }
 0x378   :  { %3675 = vpow2.f32 %v548_v10 }
 0x381   :  { %v3674_v11 = vpop.eup %3673 }
 0x382   :  { %v550_v12 = vsel %vm448_vm3, %v3674_v11, 0.0 }
 0x383   :  { %551 = vadd.xlane.f32.xlu0 %v550_v12 }
 0x385   :  { %v3676_v13 = vpop.eup %3675 }
 0x386   :  { %v553_v14 = vsel %vm448_vm3, %v3676_v13, 0.0 }
 0x387   :  { %554 = vadd.xlane.f32.xlu1 %v553_v14 }
 0x40c   :  { %v552_v16 = vpop.xlane.xlu0 %551 }
 0x40d   :  { %3677 = vrcp.f32 %v552_v16 }
 0x410   :  { %v555_v17 = vpop.xlane.xlu1 %554 }
 0x411   :  { %3679 = vrcp.f32 %v555_v17 }
 0x41a   :  { %v3678_v18 = vpop.eup %3677 }
 0x41b   :  { %v558_v19 = vmul.f32 %v3678_v18, %v3674_v11 }
 0x41d   :  { %3427 = vmatprep.mubr.msk.f32.mxu1 %vm448_vm3, %v558_v19 }
 0x41e   :  { %v3680_v20 = vpop.eup %3679 }
 0x41f   :  { %v559_v21 = vmul.f32 %v3680_v20, %v3676_v13  ;;  %v3096_v13 = vld [vmem:[%s4383_s10] ss:$0 sm:$0xff] }
 0x421   :  { %3428 = vmatmul.mubr.msk.f32.vlgmr.msra.gmra.mxu1 %vm448_vm3, %v559_v21 }
 0x422   :  { %3431 = vmatpush3.msra.mxu1 %v3063_v15  ;;  %3438 = vmatprep.mubr.msk.f32.mxu1 %vm90_vm0, %v3891_v27 }
 0x423   :  { %3432 = vmatprep.subr.mxu1 %v3062_v22 }
 0x424   :  { %3433 = vmatpush3.msra.mxu1 %v3062_v22 }
 0x425   :  { %3434 = vmatprep.subr.mxu1 %v3061_v23 }
 0x426   :  { %3435 = vmatpush3.msra.mxu1 %v3061_v23 }
 0x427   :  { %3436 = vmatprep.subr.mxu1 %v3060_v24 }
 0x428   :  { %3437 = vmatpush3.msra.mxu1 %v3060_v24 }
 0x429   :  { %3439 = vmatmul.mubr.msk.f32.vlgmr.msra.gmra.mxu1 %vm90_vm0, %v3893_v28  ;;  %3452 = vmatprep.subr.mxu1 %v3079_v25 }
 0x42a   :  { %3453 = vmatpush3.msra.mxu1 %v3079_v25  ;;  %3460 = vmatprep.mubr.msk.f32.mxu1 %vm90_vm0, %v3891_v27 }
 0x42b   :  { %3454 = vmatprep.subr.mxu1 %v3078_v26 }
 0x42c   :  { %3455 = vmatpush3.msra.mxu1 %v3078_v26 }
 0x42d   :  { %3456 = vmatprep.subr.mxu1 %v3077_v29 }
 0x42e   :  { %3457 = vmatpush3.msra.mxu1 %v3077_v29 }
 0x42f   :  { %3458 = vmatprep.subr.mxu1 %v3076_v30 }
 0x430   :  { %3459 = vmatpush3.msra.mxu1 %v3076_v30 }
 0x431   :  { %3461 = vmatmul.mubr.msk.f32.vlgmr.msra.gmra.mxu1 %vm90_vm0, %v3893_v28 }
 0x4e1   :  { %v3429_v31 = vpop.f32.mrf.mxu1 }
 0x4e3   :  { %v632_v32 = vpop.f32.mrf.mxu1 }
 0x4e9   :  { %v3440_v33 = vpop.f32.mrf.mxu1 }
 0x4ea   :  { %v728_v37 = vadd.f32 %v3440_v33, %v3065_v34  ;;  %v1322_v33 = vld [vmem:[%s4384_s13 + $0x10] sm:$0xff] }
 0x4eb   :  { %v722_v35 = vpop.f32.mrf.mxu1 }
 0x4ec   :  { %v723_v36 = vadd.f32 %v3065_v34, %v722_v35  ;;  %v1321_v34 = vld [vmem:[%s4384_s13 + $0x8] sm:$0xff]  ;;  %v1320_v35 = vld [vmem:[%s4384_s13] sm:$0xff] }
 0x4ee   :  { %3467 = vmatprep.mubr.msk.f32.mxu0 %vm448_vm3, %v723_v36  ;;  %v1421_v36 = vld [vmem:[%s4385_s15 + $0x38] sm:$0xff] }
 0x4ef   :  { %3468 = vmatmul.mubr.msk.f32.vlgmr.msra.gmra.mxu0 %vm448_vm3, %v728_v37  ;;  %v1420_v37 = vld [vmem:[%s4385_s15 + $0x30] sm:$0xff] }
 0x4f0   :  { %3478 = vmatpush3.msra.mxu0 %v3091_v62  ;;  %v3099_v62 = vld [vmem:[%s4388_s14] ss:$0 sm:$0xff] }
 0x4f1   :  { %v3462_v39 = vpop.f32.mrf.mxu1  ;;  %3479 = vmatprep.subr.mxu0 %v3090_v6 }
 0x4f2   :  { %v904_v40 = vadd.f32 %v3462_v39, %v3081_v38  ;;  %3480 = vmatpush3.msra.mxu0 %v3090_v6  ;;  %v1418_v39 = vld [vmem:[%s4385_s15 + $0x20] sm:$0xff] }
 0x4f3   :  { %v898_v41 = vpop.f32.mrf.mxu1 }
 0x4f4   :  { %v899_v42 = vadd.f32 %v3081_v38, %v898_v41  ;;  %3470 = vmatprep.subr.mxu1 %v904_v40  ;;  %v1419_v38 = vld [vmem:[%s4385_s15 + $0x28] sm:$0xff] }
 0x4f5   :  { %3471 = vmatpush3.msra.mxu1 %v904_v40 }
 0x4f6   :  { %3472 = vmatprep.subr.mxu1 %v899_v42 }
 0x4f7   :  { %3473 = vmatpush3.msra.mxu1 %v899_v42 }
 0x4f8   :  { %3484 = vmatprep.subr.mxu1 %v642_v61 }
 0x5af   :  { %v3469_v43 = vpop.f32.mrf.mxu0 }
 0x5b0   :  { %v995_v47 = vsel %vm3955_vm9, %v3469_v43, -1e+30 }
 0x5b1   :  { %v985_v44 = vpop.f32.mrf.mxu0  ;;  %v999_v48 = vsel %vm448_vm3, %v995_v47, -inf }
 0x5b2   :  { %v994_v45 = vsel %vm3951_vm8, %v985_v44, -1e+30 }
 0x5b3   :  { %v996_v46 = vsel %vm448_vm3, %v994_v45, -inf }
 0x5b4   :  { %997 = vmax.xlane.f32.xlu1 %v996_v46 }
 0x5b8   :  { %1000 = vmax.xlane.f32.xlu1 %v999_v48 }
 0x63d   :  { %v998_v49 = vpop.xlane.xlu1 %997 }
 0x63e   :  { %v1002_v50 = vsub.f32 %v994_v45, %v998_v49  ;;  %v3098_v49 = vld [vmem:[%s4387_s12] ss:$0 sm:$0xff] }
 0x640   :  { %v1004_v51 = vmul.f32 1.442695, %v1002_v50 }
 0x641   :  { %v1001_v52 = vpop.xlane.xlu1 %1000 }
 0x642   :  { %3681 = vpow2.f32 %v1004_v51  ;;  %v1003_v53 = vsub.f32 %v995_v47, %v1001_v52  ;;  %v3097_v47 = vld [vmem:[%s4386_s11] ss:$0 sm:$0xff] }
 0x644   :  { %v1006_v54 = vmul.f32 1.442695, %v1003_v53 }
 0x646   :  { %3683 = vpow2.f32 %v1006_v54 }
 0x64f   :  { %v3682_v55 = vpop.eup %3681 }
 0x650   :  { %v1008_v56 = vsel %vm448_vm3, %v3682_v55, 0.0 }
 0x651   :  { %1009 = vadd.xlane.f32.xlu1 %v1008_v56  ;;  %v1417_v56 = vld [vmem:[%s4385_s15 + $0x18] sm:$0xff] }
 0x653   :  { %v3684_v59 = vpop.eup %3683 }
 0x654   :  { %v1011_v60 = vsel %vm448_vm3, %v3684_v59, 0.0 }
 0x655   :  { %1012 = vadd.xlane.f32.xlu1 %v1011_v60  ;;  %v1415_v60 = vld [vmem:[%s4385_s15 + $0x8] sm:$0xff] }
 0x6da   :  { %v1010_v63 = vpop.xlane.xlu1 %1009 }
 0x6db   :  { %3685 = vrcp.f32 %v1010_v63 }
 0x6de   :  { %v1013_v0 = vpop.xlane.xlu1 %1012 }
 0x6df   :  { %3687 = vrcp.f32 %v1013_v0 }
 0x6e8   :  { %v3686_v1 = vpop.eup %3685 }
 0x6e9   :  { %v1016_v2 = vmul.f32 %v3686_v1, %v3682_v55 }
 0x6eb   :  { %3474 = vmatprep.mubr.msk.f32.mxu1 %vm448_vm3, %v1016_v2 }
 0x6ec   :  { %v3688_v3 = vpop.eup %3687 }
 0x6ed   :  { %v1017_v4 = vmul.f32 %v3688_v3, %v3684_v59  ;;  %v1416_v59 = vld [vmem:[%s4385_s15 + $0x10] sm:$0xff] }
 0x6ef   :  { %3475 = vmatmul.mubr.msk.f32.vlgmr.msra.gmra.mxu1 %vm448_vm3, %v1017_v4 }
 0x6f0   :  { %3485 = vmatpush3.msra.mxu1 %v642_v61  ;;  %3488 = vmatprep.mubr.msk.f32.mxu1 %vm448_vm3, %v632_v32  ;;  %v1414_v61 = vld [vmem:[%s4385_s15] sm:$0xff] }
 0x6f1   :  { %3486 = vmatprep.subr.mxu1 %v641_v5 }
 0x6f2   :  { %3487 = vmatpush3.msra.mxu1 %v641_v5  ;;  %v3102_v5 = vld [vmem:[%s4389_s16] ss:$0 sm:$0xff] }
 0x6f3   :  { %3489 = vmatmul.mubr.msk.f32.vlgmr.msra.gmra.mxu1 %vm448_vm3, %v3429_v31  ;;  %3502 = vmatprep.subr.mxu1 %v1421_v36 }
 0x6f4   :  { %3503 = vmatpush3.msra.mxu1 %v1421_v36 }
 0x6f5   :  { %3504 = vmatprep.subr.mxu1 %v1420_v37 }
 0x6f6   :  { %3505 = vmatpush3.msra.mxu1 %v1420_v37 }
 0x6f7   :  { %3506 = vmatprep.subr.mxu1 %v1419_v38 }
 0x6f8   :  { %3507 = vmatpush3.msra.mxu1 %v1419_v38 }
 0x6f9   :  { %3508 = vmatprep.subr.mxu1 %v1418_v39 }
 0x6fa   :  { %3509 = vmatpush3.msra.mxu1 %v1418_v39 }
 0x6fb   :  { %3510 = vmatprep.subr.mxu1 %v1417_v56 }
 0x6fc   :  { %3511 = vmatpush3.msra.mxu1 %v1417_v56  ;;  %v3112_v56 = vld [vmem:[%s4380_s4 + $0x2] ss:$0 sm:$0xff] }
 0x6fd   :  { %3512 = vmatprep.subr.mxu1 %v1416_v59 }
 0x6fe   :  { %3513 = vmatpush3.msra.mxu1 %v1416_v59 }
 0x6ff   :  { %3514 = vmatprep.subr.mxu1 %v1415_v60 }
 0x700   :  { %3515 = vmatpush3.msra.mxu1 %v1415_v60 }
 0x701   :  { %3516 = vmatprep.subr.mxu1 %v1414_v61 }
 0x702   :  { %3517 = vmatpush3.msra.mxu1 %v1414_v61 }
 0x7af   :  { %v3476_v7 = vpop.f32.mrf.mxu1 }
 0x7b1   :  { %v1090_v8 = vpop.f32.mrf.mxu1 }
 0x7b2   :  { %3481 = vmatprep.mubr.msk.f32.mxu0 %vm448_vm3, %v1090_v8 }
 0x7b3   :  { %3482 = vmatmul.mubr.msk.f32.vlgmr.msra.gmra.mxu0 %vm448_vm3, %v3476_v7  ;;  %v3490_v9 = vpop.f32.mrf.mxu1 }
 0x7b5   :  { %v1255_v12 = vpop.f32.mrf.mxu1 }
 0x873   :  { %v3483_v10 = vpop.f32.mrf.mxu0 }
 0x874   :  { %v1261_v11 = vadd.f32 %v3490_v9, %v3483_v10 }
 0x875   :  { %v1174_v14 = vpop.f32.mrf.mxu0 }
 0x876   :  { %v1256_v15 = vadd.f32 %v1255_v12, %v1174_v14  ;;  %v1272_v16 = vadd.f32 %v3096_v13, %v1261_v11 }
 0x878   :  { %v1271_v17 = vadd.f32 %v3096_v13, %v1256_v15  ;;  %v1274_v20 = vadd.f32 %v1272_v16, %v3893_v28  ;;  %v1323_v28 = vld [vmem:[%s4384_s13 + $0x18] sm:$0xff] }
 0x879   :  { %3491 = vmatprep.subr.mxu0 %v1323_v28 }
 0x87a   :  { %v1273_v18 = vadd.f32 %v1271_v17, %v3891_v27  ;;  %v1280_v21 = vsel %vm90_vm0, %v1274_v20, 0.0  ;;  %3492 = vmatpush3.msra.mxu0 %v1323_v28  ;;  %v3118_v28 = vld [vmem:[%s4410_s0 + $0x58] sm:$0xff] }
 0x87b   :  { %3493 = vmatprep.subr.mxu0 %v1322_v33 }
 0x87c   :  { %v1277_v19 = vsel %vm90_vm0, %v1273_v18, 0.0  ;;  %3494 = vmatpush3.msra.mxu0 %v1322_v33 }
 0x87d   :  { %1278 = vadd.xlane.f32.xlu1 %v1277_v19  ;;  %3495 = vmatprep.subr.mxu0 %v1321_v34 }
 0x87e   :  { %3496 = vmatpush3.msra.mxu0 %v1321_v34 }
 0x87f   :  { %3497 = vmatprep.subr.mxu0 %v1320_v35 }
 0x880   :  { %3498 = vmatpush3.msra.mxu0 %v1320_v35 }
 0x881   :  { %1281 = vadd.xlane.f32.xlu1 %v1280_v21 }
 0x906   :  { %v1279_v22 = vpop.xlane.xlu1 %1278 }
 0x907   :  { %v1284_v23 = vmul.f32 0.03125, %v1279_v22 }
 0x909   :  { %v1286_v24 = vsub.f32 %v1273_v18, %v1284_v23 }
 0x90a   :  { %v1282_v25 = vpop.xlane.xlu1 %1281 }
 0x90b   :  { %v1285_v26 = vmul.f32 0.03125, %v1282_v25  ;;  %v1288_v29 = vmul.f32 %v1286_v24, %v1286_v24  ;;  %v3126_v25 = vld [vmem:[%s4411_s29 + $0x58] sm:$0xff] }
 0x90c   :  { %3543 = vmatprep.subr.mxu1 %v3126_v25 }
 0x90d   :  { %v1287_v30 = vsub.f32 %v1274_v20, %v1285_v26  ;;  %v1290_v31 = vsel %vm90_vm0, %v1288_v29, 0.0  ;;  %v3109_v26 = vld [vmem:[%s4409_s25 + $0x50] sm:$0xff] }
 0x90e   :  { %1291 = vadd.xlane.f32.xlu1 %v1290_v31  ;;  %v3125_v29 = vld [vmem:[%s4411_s29 + $0x50] sm:$0xff]  ;;  %v3124_v31 = vld [vmem:[%s4411_s29 + $0x48] sm:$0xff] }
 0x90f   :  { %v1289_v32 = vmul.f32 %v1287_v30, %v1287_v30 }
 0x911   :  { %v1293_v27 = vsel %vm90_vm0, %v1289_v32, 0.0  ;;  %v3107_v32 = vld [vmem:[%s4409_s25 + $0x40] sm:$0xff] }
 0x912   :  { %1294 = vadd.xlane.f32.xlu0 %v1293_v27  ;;  %v3123_v27 = vld [vmem:[%s4411_s29 + $0x40] sm:$0xff] }
 0x997   :  { %v1292_v40 = vpop.xlane.xlu1 %1291 }
 0x998   :  { %v1296_v41 = vmul.f32 0.03125, %v1292_v40  ;;  %v3105_v40 = vld [vmem:[%s4390_s17] ss:$0 sm:$0xff] }
 0x99a   :  { %v1298_v42 = vadd.f32 1e-05, %v1296_v41 }
 0x99b   :  { %v1295_v43 = vpop.xlane.xlu0 %1294 }
 0x99c   :  { %3689 = vrsqrt.f32 %v1298_v42  ;;  %v1297_v44 = vmul.f32 0.03125, %v1295_v43 }
 0x99e   :  { %v1299_v45 = vadd.f32 1e-05, %v1297_v44 }
 0x9a0   :  { %3691 = vrsqrt.f32 %v1299_v45  ;;  %v3106_v45 = vld [vmem:[%s4391_s18] ss:$0 sm:$0xff] }
 0x9a9   :  { %v3690_v46 = vpop.eup %3689 }
 0x9aa   :  { %v1302_v48 = vmul.f32 %v3690_v46, %v1286_v24  ;;  %v3110_v24 = vld [vmem:[%s4409_s25 + $0x58] sm:$0xff] }
 0x9ab   :  { %3521 = vmatprep.subr.mxu0 %v3110_v24 }
 0x9ac   :  { %v1310_v50 = vmul.f32 %v3097_v47, %v1302_v48 }
 0x9ad   :  { %v3692_v51 = vpop.eup %3691 }
 0x9ae   :  { %v1303_v52 = vmul.f32 %v3692_v51, %v1287_v30  ;;  %v1318_v53 = vadd.f32 %v3098_v49, %v1310_v50  ;;  %v3108_v30 = vld [vmem:[%s4409_s25 + $0x48] sm:$0xff]  ;;  %v3115_v51 = vld [vmem:[%s4410_s0 + $0x40] sm:$0xff] }
 0x9af   :  { %v3116_v50 = vld [vmem:[%s4410_s0 + $0x48] sm:$0xff] }
 0x9b0   :  { %v1311_v54 = vmul.f32 %v3097_v47, %v1303_v52  ;;  %3499 = vmatprep.mubr.msk.f32.mxu0 %vm90_vm0, %v1318_v53  ;;  %v3128_v52 = vld [vmem:[%s4381_s8 + $0x2] ss:$0 sm:$0xff] }
 0x9b2   :  { %v1319_v55 = vadd.f32 %v3098_v49, %v1311_v54  ;;  %v3117_v49 = vld [vmem:[%s4410_s0 + $0x50] sm:$0xff] }
 0x9b4   :  { %3500 = vmatmul.mubr.msk.f32.vlgmr.msra.gmra.mxu0 %vm90_vm0, %v1319_v55 }
 0x9b5   :  { %3522 = vmatpush3.msra.mxu0 %v3110_v24 }
 0x9b6   :  { %3523 = vmatprep.subr.mxu0 %v3109_v26 }
 0x9b7   :  { %3524 = vmatpush3.msra.mxu0 %v3109_v26 }
 0x9b8   :  { %3525 = vmatprep.subr.mxu0 %v3108_v30 }
 0x9b9   :  { %3526 = vmatpush3.msra.mxu0 %v3108_v30 }
 0x9ba   :  { %3527 = vmatprep.subr.mxu0 %v3107_v32 }
 0x9bb   :  { %3528 = vmatpush3.msra.mxu0 %v3107_v32  ;;  %v3142_v32 = vld [vmem:[%s4409_s25 + $0x78] sm:$0xff] }
 0x9bc   :  { %3532 = vmatprep.subr.mxu0 %v3118_v28 }
 0xa74   :  { %v3501_v63 = vpop.f32.mrf.mxu0 }
 0xa75   :  { %v1409_v0 = vadd.f32 %v3501_v63, %v3099_v62  ;;  %v3120_v63 = vld [vmem:[%s4379_s6 + $0x2] ss:$0 sm:$0xff] }
 0xa76   :  { %v1403_v1 = vpop.f32.mrf.mxu0 }
 0xa77   :  { %v1404_v2 = vadd.f32 %v3099_v62, %v1403_v1  ;;  %v1413_v4 = vmax.f32 %v1409_v0, 0.0 }
 0xa79   :  { %v1412_v3 = vmax.f32 %v1404_v2, 0.0 }
 0xa7b   :  { %3518 = vmatprep.mubr.msk.f32.mxu1 %vm1429_vm10, %v1412_v3 }
 0xa7c   :  { %3519 = vmatmul.mubr.msk.f32.vlgmr.msra.gmra.mxu1 %vm1429_vm10, %v1413_v4  ;;  %v3150_v4 = vld [vmem:[%s4410_s0 + $0x78] sm:$0xff] }
 0xa7d   :  { %3544 = vmatpush3.msra.mxu1 %v3126_v25 }
 0xa7e   :  { %3545 = vmatprep.subr.mxu1 %v3125_v29 }
 0xa7f   :  { %3546 = vmatpush3.msra.mxu1 %v3125_v29 }
 0xa80   :  { %3547 = vmatprep.subr.mxu1 %v3124_v31 }
 0xa81   :  { %3548 = vmatpush3.msra.mxu1 %v3124_v31 }
 0xa82   :  { %3549 = vmatprep.subr.mxu1 %v3123_v27 }
 0xa83   :  { %3550 = vmatpush3.msra.mxu1 %v3123_v27 }
 0xb3c   :  { %v3520_v6 = vpop.f32.mrf.mxu1 }
 0xb3d   :  { %v1508_v7 = vadd.f32 %v3520_v6, %v3102_v5  ;;  %v3149_v6 = vld [vmem:[%s4410_s0 + $0x70] sm:$0xff] }
 0xb3e   :  { %v1502_v8 = vpop.f32.mrf.mxu1 }
 0xb3f   :  { %v1503_v9 = vadd.f32 %v3102_v5, %v1502_v8  ;;  %v1512_v10 = vadd.f32 %v1508_v7, %v1319_v55  ;;  %v3148_v7 = vld [vmem:[%s4410_s0 + $0x68] sm:$0xff]  ;;  %v3147_v8 = vld [vmem:[%s4410_s0 + $0x60] sm:$0xff] }
 0xb41   :  { %v1518_v11 = vsel %vm90_vm0, %v1512_v10, 0.0  ;;  %v1511_v12 = vadd.f32 %v1503_v9, %v1318_v53 }
 0xb42   :  { %1519 = vadd.xlane.f32.xlu0 %v1518_v11 }
 0xb43   :  { %v1515_v13 = vsel %vm90_vm0, %v1511_v12, 0.0 }
 0xb44   :  { %1516 = vadd.xlane.f32.xlu1 %v1515_v13 }
 0xbcb   :  { %v1520_v14 = vpop.xlane.xlu0 %1519 }
 0xbcc   :  { %v1522_v15 = vmul.f32 0.03125, %v1520_v14 }
 0xbcd   :  { %v1517_v16 = vpop.xlane.xlu1 %1516 }
 0xbce   :  { %v1524_v17 = vsub.f32 %v1512_v10, %v1522_v15  ;;  %v1521_v18 = vmul.f32 0.03125, %v1517_v16  ;;  %v3152_v15 = vld [vmem:[%s4379_s6 + $0x3] ss:$0 sm:$0xff] }
 0xbd0   :  { %v1523_v19 = vsub.f32 %v1511_v12, %v1521_v18  ;;  %v1526_v20 = vmul.f32 %v1524_v17, %v1524_v17 }
 0xbd2   :  { %v1530_v21 = vsel %vm90_vm0, %v1526_v20, 0.0  ;;  %v1525_v22 = vmul.f32 %v1523_v19, %v1523_v19 }
 0xbd3   :  { %1531 = vadd.xlane.f32.xlu0 %v1530_v21 }
 0xbd4   :  { %v1527_v23 = vsel %vm90_vm0, %v1525_v22, 0.0 }
 0xbd5   :  { %1528 = vadd.xlane.f32.xlu1 %v1527_v23 }
 0xc5c   :  { %v1532_v33 = vpop.xlane.xlu0 %1531 }
 0xc5d   :  { %v1534_v34 = vmul.f32 0.03125, %v1532_v33 }
 0xc5e   :  { %v1529_v35 = vpop.xlane.xlu1 %1528 }
 0xc5f   :  { %v1536_v36 = vadd.f32 1e-05, %v1534_v34  ;;  %v1533_v37 = vmul.f32 0.03125, %v1529_v35 }
 0xc61   :  { %3693 = vrsqrt.f32 %v1536_v36  ;;  %v1535_v38 = vadd.f32 1e-05, %v1533_v37  ;;  %v3141_v37 = vld [vmem:[%s4409_s25 + $0x70] sm:$0xff] }
 0xc63   :  { %3695 = vrsqrt.f32 %v1535_v38  ;;  %v3140_v38 = vld [vmem:[%s4409_s25 + $0x68] sm:$0xff] }
 0xc6e   :  { %v3694_v39 = vpop.eup %3693 }
 0xc6f   :  { %v1540_v41 = vmul.f32 %v3694_v39, %v1524_v17  ;;  %v3139_v39 = vld [vmem:[%s4409_s25 + $0x60] sm:$0xff] }
 0xc70   :  { %v3696_v42 = vpop.eup %3695 }
 0xc71   :  { %v1539_v43 = vmul.f32 %v3696_v42, %v1523_v19  ;;  %v1548_v44 = vmul.f32 %v3105_v40, %v1540_v41  ;;  %v3157_v41 = vld [vmem:[%s4411_s29 + $0x70] sm:$0xff]  ;;  %v3156_v42 = vld [vmem:[%s4411_s29 + $0x68] sm:$0xff] }
 0xc73   :  { %v1547_v46 = vmul.f32 %v3105_v40, %v1539_v43  ;;  %v4142_v48 = vadd.f32 %v3106_v45, %v1548_v44  ;;  %v3158_v40 = vld [vmem:[%s4411_s29 + $0x78] sm:$0xff]  ;;  %v3155_v43 = vld [vmem:[%s4411_s29 + $0x60] sm:$0xff] }
 0xc75   :  { %v4140_v47 = vadd.f32 %v3106_v45, %v1547_v46 }
 0xc77   :  { %3529 = vmatprep.mubr.msk.f32.mxu0 %vm90_vm0, %v4140_v47  ;;  %3551 = vmatprep.mubr.msk.f32.mxu1 %vm90_vm0, %v4140_v47 }
 0xc78   :  { %3530 = vmatmul.mubr.msk.f32.vlgmr.msra.gmra.mxu0 %vm90_vm0, %v4142_v48  ;;  %3552 = vmatmul.mubr.msk.f32.vlgmr.msra.gmra.mxu1 %vm90_vm0, %v4142_v48 }
 0xc79   :  { %3533 = vmatpush3.msra.mxu0 %v3118_v28  ;;  %3540 = vmatprep.mubr.msk.f32.mxu0 %vm90_vm0, %v4140_v47 }
 0xc7a   :  { %3534 = vmatprep.subr.mxu0 %v3117_v49 }
 0xc7b   :  { %3535 = vmatpush3.msra.mxu0 %v3117_v49  ;;  %v3144_v49 = vld [vmem:[%s4380_s4 + $0x3] ss:$0 sm:$0xff] }
 0xc7c   :  { %3536 = vmatprep.subr.mxu0 %v3116_v50 }
 0xc7d   :  { %3537 = vmatpush3.msra.mxu0 %v3116_v50 }
 0xc7e   :  { %3538 = vmatprep.subr.mxu0 %v3115_v51 }
 0xc7f   :  { %3539 = vmatpush3.msra.mxu0 %v3115_v51 }
 0xc80   :  { %3541 = vmatmul.mubr.msk.f32.vlgmr.msra.gmra.mxu0 %vm90_vm0, %v4142_v48 }
 0xd38   :  { %v3531_v53 = vpop.f32.mrf.mxu0  ;;  %v3553_v54 = vpop.f32.mrf.mxu1 }
 0xd39   :  { %v1824_v55 = vadd.f32 %v3553_v54, %v3128_v52  ;;  %v1648_v5 = vadd.f32 %v3531_v53, %v3112_v56  ;;  %v3160_v53 = vld [vmem:[%s4381_s8 + $0x3] ss:$0 sm:$0xff] }
 0xd3a   :  { %v1642_v59 = vpop.f32.mrf.mxu0  ;;  %v1818_v60 = vpop.f32.mrf.mxu1 }
 0xd3b   :  { %v1643_v61 = vadd.f32 %v3112_v56, %v1642_v59  ;;  %v1819_v62 = vadd.f32 %v3128_v52, %v1818_v60  ;;  %3561 = vmatprep.subr.mxu1 %v1824_v55 }
 0xd3c   :  { %3562 = vmatpush3.msra.mxu1 %v1824_v55 }
 0xd3d   :  { %3558 = vmatprep.mubr.msk.f32.mxu0 %vm448_vm3, %v1643_v61  ;;  %3563 = vmatprep.subr.mxu1 %v1819_v62 }
 0xd3e   :  { %3564 = vmatpush3.msra.mxu1 %v1819_v62 }
 0xd3f   :  { %3568 = vmatprep.subr.mxu1 %v3142_v32 }
 0xd40   :  { %v3542_v0 = vpop.f32.mrf.mxu0 }
 0xd41   :  { %v1736_v1 = vadd.f32 %v3542_v0, %v3120_v63 }
 0xd42   :  { %v1730_v2 = vpop.f32.mrf.mxu0 }
 0xd43   :  { %v1731_v3 = vadd.f32 %v3120_v63, %v1730_v2  ;;  %3554 = vmatprep.subr.msk.mxu0 %vm448_vm3, %v1736_v1 }
 0xd44   :  { %3555 = vmatpush3.xpose.msk.msra.mxu0 %vm448_vm3, %v1736_v1 }
 0xd45   :  { %3556 = vmatprep.subr.msk.mxu0 %vm448_vm3, %v1731_v3 }
 0xd48   :  { %3557 = vmatpush3.xpose.msk.msra.mxu0 %vm448_vm3, %v1731_v3 }
 0xd49   :  { %3579 = vmatprep.subr.mxu0 %v3150_v4 }
 0xd4b   :  { %3559 = vmatmul.mubr.msk.f32.vlgmr.msra.gmra.mxu0 %vm448_vm3, %v1648_v5 }
 0xd4c   :  { %3580 = vmatpush3.msra.mxu0 %v3150_v4  ;;  %3587 = vmatprep.mubr.msk.f32.mxu0 %vm90_vm0, %v4140_v47 }
 0xd4d   :  { %3581 = vmatprep.subr.mxu0 %v3149_v6 }
 0xd4e   :  { %3582 = vmatpush3.msra.mxu0 %v3149_v6 }
 0xd4f   :  { %3583 = vmatprep.subr.mxu0 %v3148_v7 }
 0xd50   :  { %3584 = vmatpush3.msra.mxu0 %v3148_v7 }
 0xd51   :  { %3585 = vmatprep.subr.mxu0 %v3147_v8 }
 0xd52   :  { %3586 = vmatpush3.msra.mxu0 %v3147_v8 }
 0xd53   :  { %3588 = vmatmul.mubr.msk.f32.vlgmr.msra.gmra.mxu0 %vm90_vm0, %v4142_v48 }
 0xe0b   :  { %v3560_v9 = vpop.f32.mrf.mxu0 }
 0xe0c   :  { %v1915_v10 = vsel %vm3955_vm9, %v3560_v9, -1e+30 }
 0xe0d   :  { %v1905_v11 = vpop.f32.mrf.mxu0  ;;  %v1919_v12 = vsel %vm448_vm3, %v1915_v10, -inf }
 0xe0e   :  { %v1914_v13 = vsel %vm3951_vm8, %v1905_v11, -1e+30  ;;  %1920 = vmax.xlane.f32.xlu0 %v1919_v12  ;;  %v3170_v11 = vld [vmem:[%s4382_s9 + $0x38] sm:$0xff] }
 0xe0f   :  { %v1916_v14 = vsel %vm448_vm3, %v1914_v13, -inf }
 0xe10   :  { %1917 = vmax.xlane.f32.xlu1 %v1916_v14 }
 0xe13   :  { %v3589_v16 = vpop.f32.mrf.mxu0 }
 0xe14   :  { %v2195_v17 = vadd.f32 %v3589_v16, %v3152_v15 }
 0xe15   :  { %v2189_v18 = vpop.f32.mrf.mxu0 }
 0xe16   :  { %v2190_v19 = vadd.f32 %v3152_v15, %v2189_v18  ;;  %3601 = vmatprep.subr.msk.mxu0 %vm448_vm3, %v2195_v17  ;;  %v3137_v18 = vld [vmem:[%s4382_s9 + $0x20] sm:$0xff] }
 0xe17   :  { %3602 = vmatpush3.xpose.msk.msra.mxu0 %vm448_vm3, %v2195_v17 }
 0xe18   :  { %3603 = vmatprep.subr.msk.mxu0 %vm448_vm3, %v2190_v19 }
 0xe1b   :  { %3604 = vmatpush3.xpose.msk.msra.mxu0 %vm448_vm3, %v2190_v19  ;;  %v3169_v19 = vld [vmem:[%s4382_s9 + $0x30] sm:$0xff] }
 0xe1c   :  { %3615 = vmatprep.subr.mxu0 %v3170_v11 }
 0xe97   :  { %v1921_v20 = vpop.xlane.xlu0 %1920 }
 0xe98   :  { %v1923_v21 = vsub.f32 %v1915_v10, %v1921_v20  ;;  %v3138_v10 = vld [vmem:[%s4382_s9 + $0x28] sm:$0xff] }
 0xe99   :  { %v1918_v22 = vpop.xlane.xlu1 %1917 }
 0xe9a   :  { %v1926_v23 = vmul.f32 1.442695, %v1923_v21  ;;  %v1922_v24 = vsub.f32 %v1914_v13, %v1918_v22 }
 0xe9c   :  { %3697 = vpow2.f32 %v1926_v23  ;;  %v1924_v25 = vmul.f32 1.442695, %v1922_v24  ;;  %v3176_v24 = vld [vmem:[%s4383_s10 + $0x1] ss:$0 sm:$0xff] }
 0xe9e   :  { %3699 = vpow2.f32 %v1924_v25 }
 0xea9   :  { %v3698_v26 = vpop.eup %3697 }
 0xeaa   :  { %v1931_v29 = vsel %vm448_vm3, %v3698_v26, 0.0 }
 0xeab   :  { %v3700_v30 = vpop.eup %3699  ;;  %1932 = vadd.xlane.f32.xlu0 %v1931_v29 }
 0xeac   :  { %v1928_v31 = vsel %vm448_vm3, %v3700_v30, 0.0 }
 0xead   :  { %1929 = vadd.xlane.f32.xlu1 %v1928_v31 }
 0xf34   :  { %v1933_v27 = vpop.xlane.xlu0 %1932 }
 0xf35   :  { %3701 = vrcp.f32 %v1933_v27 }
 0xf36   :  { %v1930_v28 = vpop.xlane.xlu1 %1929 }
 0xf37   :  { %3703 = vrcp.f32 %v1930_v28 }
 0xf42   :  { %v3702_v33 = vpop.eup %3701 }
 0xf43   :  { %v1937_v36 = vmul.f32 %v3702_v33, %v3698_v26 }
 0xf44   :  { %v3704_v34 = vpop.eup %3703 }
 0xf45   :  { %v1936_v35 = vmul.f32 %v3704_v34, %v3700_v30 }
 0xf47   :  { %3565 = vmatprep.mubr.msk.f32.mxu1 %vm448_vm3, %v1936_v35 }
 0xf48   :  { %3566 = vmatmul.mubr.msk.f32.vlgmr.msra.gmra.mxu1 %vm448_vm3, %v1937_v36 }
 0xf49   :  { %3569 = vmatpush3.msra.mxu1 %v3142_v32  ;;  %3576 = vmatprep.mubr.msk.f32.mxu1 %vm90_vm0, %v4140_v47 }
 0xf4a   :  { %3570 = vmatprep.subr.mxu1 %v3141_v37 }
 0xf4b   :  { %3571 = vmatpush3.msra.mxu1 %v3141_v37 }
 0xf4c   :  { %3572 = vmatprep.subr.mxu1 %v3140_v38 }
 0xf4d   :  { %3573 = vmatpush3.msra.mxu1 %v3140_v38 }
 0xf4e   :  { %3574 = vmatprep.subr.mxu1 %v3139_v39 }
 0xf4f   :  { %3575 = vmatpush3.msra.mxu1 %v3139_v39 }
 0xf50   :  { %3577 = vmatmul.mubr.msk.f32.vlgmr.msra.gmra.mxu1 %vm90_vm0, %v4142_v48  ;;  %3590 = vmatprep.subr.mxu1 %v3158_v40 }
 0xf51   :  { %3591 = vmatpush3.msra.mxu1 %v3158_v40  ;;  %3598 = vmatprep.mubr.msk.f32.mxu1 %vm90_vm0, %v4140_v47 }
 0xf52   :  { %3592 = vmatprep.subr.mxu1 %v3157_v41 }
 0xf53   :  { %3593 = vmatpush3.msra.mxu1 %v3157_v41 }
 0xf54   :  { %3594 = vmatprep.subr.mxu1 %v3156_v42 }
 0xf55   :  { %3595 = vmatpush3.msra.mxu1 %v3156_v42 }
 0xf56   :  { %3596 = vmatprep.subr.mxu1 %v3155_v43 }
 0xf57   :  { %3597 = vmatpush3.msra.mxu1 %v3155_v43 }
 0xf58   :  { %3599 = vmatmul.mubr.msk.f32.vlgmr.msra.gmra.mxu1 %vm90_vm0, %v4142_v48 }
0x1008   :  { %v3567_v44 = vpop.f32.mrf.mxu1 }
0x100a   :  { %v2010_v45 = vpop.f32.mrf.mxu1 }
0x1010   :  { %v3578_v46 = vpop.f32.mrf.mxu1 }
0x1011   :  { %v2107_v52 = vadd.f32 %v3578_v46, %v3144_v49  ;;  %v3181_v46 = vld [vmem:[%s4384_s13 + $0x20] sm:$0xff] }
0x1012   :  { %v2101_v50 = vpop.f32.mrf.mxu1 }
0x1013   :  { %v2102_v51 = vadd.f32 %v3144_v49, %v2101_v50  ;;  %v3196_v49 = vld [vmem:[%s4385_s15 + $0x78] sm:$0xff]  ;;  %v3195_v50 = vld [vmem:[%s4385_s15 + $0x70] sm:$0xff] }
0x1015   :  { %3605 = vmatprep.mubr.msk.f32.mxu0 %vm448_vm3, %v2102_v51  ;;  %v3194_v51 = vld [vmem:[%s4385_s15 + $0x68] sm:$0xff] }
0x1016   :  { %3606 = vmatmul.mubr.msk.f32.vlgmr.msra.gmra.mxu0 %vm448_vm3, %v2107_v52  ;;  %v3193_v52 = vld [vmem:[%s4385_s15 + $0x60] sm:$0xff] }
0x1017   :  { %3616 = vmatpush3.msra.mxu0 %v3170_v11 }
0x1018   :  { %v3600_v54 = vpop.f32.mrf.mxu1  ;;  %3617 = vmatprep.subr.mxu0 %v3169_v19 }
0x1019   :  { %v2283_v55 = vadd.f32 %v3600_v54, %v3160_v53  ;;  %3618 = vmatpush3.msra.mxu0 %v3169_v19 }
0x101a   :  { %v2277_v56 = vpop.f32.mrf.mxu1 }
0x101b   :  { %v2278_v59 = vadd.f32 %v3160_v53, %v2277_v56  ;;  %3608 = vmatprep.subr.mxu1 %v2283_v55 }
0x101c   :  { %3609 = vmatpush3.msra.mxu1 %v2283_v55 }
0x101d   :  { %3610 = vmatprep.subr.mxu1 %v2278_v59 }
0x101e   :  { %3611 = vmatpush3.msra.mxu1 %v2278_v59 }
0x101f   :  { %3622 = vmatprep.subr.mxu1 %v3138_v10 }
0x10d6   :  { %v3607_v60 = vpop.f32.mrf.mxu0 }
0x10d7   :  { %v2374_v61 = vsel %vm3955_vm9, %v3607_v60, -1e+30 }
0x10d8   :  { %v2364_v62 = vpop.f32.mrf.mxu0  ;;  %v2378_v63 = vsel %vm448_vm3, %v2374_v61, -inf }
0x10d9   :  { %v2373_v0 = vsel %vm3951_vm8, %v2364_v62, -1e+30  ;;  %2379 = vmax.xlane.f32.xlu0 %v2378_v63  ;;  %v3179_v62 = vld [vmem:[%s4386_s11 + $0x1] ss:$0 sm:$0xff] }
0x10da   :  { %v2375_v1 = vsel %vm448_vm3, %v2373_v0, -inf }
0x10db   :  { %2376 = vmax.xlane.f32.xlu1 %v2375_v1 }
0x1162   :  { %v2380_v2 = vpop.xlane.xlu0 %2379 }
0x1163   :  { %v2382_v3 = vsub.f32 %v2374_v61, %v2380_v2 }
0x1164   :  { %v2377_v4 = vpop.xlane.xlu1 %2376 }
0x1165   :  { %v2385_v5 = vmul.f32 1.442695, %v2382_v3  ;;  %v2381_v6 = vsub.f32 %v2373_v0, %v2377_v4  ;;  %v3180_v3 = vld [vmem:[%s4387_s12 + $0x1] ss:$0 sm:$0xff] }
0x1167   :  { %3705 = vpow2.f32 %v2385_v5  ;;  %v2383_v7 = vmul.f32 1.442695, %v2381_v6 }
0x1169   :  { %3707 = vpow2.f32 %v2383_v7  ;;  %v3192_v7 = vld [vmem:[%s4385_s15 + $0x58] sm:$0xff] }
0x1174   :  { %v3706_v58 = vpop.eup %3705 }
0x1175   :  { %v2390_v8 = vsel %vm448_vm3, %v3706_v58, 0.0 }
0x1176   :  { %v3708_v9 = vpop.eup %3707  ;;  %2391 = vadd.xlane.f32.xlu0 %v2390_v8  ;;  %v3190_v8 = vld [vmem:[%s4385_s15 + $0x48] sm:$0xff] }
0x1177   :  { %v2387_v57 = vsel %vm448_vm3, %v3708_v9, 0.0 }
0x1178   :  { %2388 = vadd.xlane.f32.xlu1 %v2387_v57  ;;  %v3186_v57 = vld [vmem:[%s4388_s14 + $0x1] ss:$0 sm:$0xff] }
0x11ff   :  { %v2392_v12 = vpop.xlane.xlu0 %2391 }
0x1200   :  { %3709 = vrcp.f32 %v2392_v12 }
0x1201   :  { %v2389_v13 = vpop.xlane.xlu1 %2388 }
0x1202   :  { %3711 = vrcp.f32 %v2389_v13 }
0x120d   :  { %v3710_v14 = vpop.eup %3709 }
0x120e   :  { %v2396_v17 = vmul.f32 %v3710_v14, %v3706_v58  ;;  %v3191_v58 = vld [vmem:[%s4385_s15 + $0x50] sm:$0xff] }
0x120f   :  { %v3712_v15 = vpop.eup %3711 }
0x1210   :  { %v2395_v16 = vmul.f32 %v3712_v15, %v3708_v9  ;;  %v3189_v9 = vld [vmem:[%s4385_s15 + $0x40] sm:$0xff] }
0x1212   :  { %3612 = vmatprep.mubr.msk.f32.mxu1 %vm448_vm3, %v2395_v16  ;;  %v3198_v16 = vld [vmem:[%s4389_s16 + $0x1] ss:$0 sm:$0xff] }
0x1213   :  { %3613 = vmatmul.mubr.msk.f32.vlgmr.msra.gmra.mxu1 %vm448_vm3, %v2396_v17 }
0x1214   :  { %3623 = vmatpush3.msra.mxu1 %v3138_v10  ;;  %3626 = vmatprep.mubr.msk.f32.mxu1 %vm448_vm3, %v2010_v45  ;;  %v3182_v45 = vld [vmem:[%s4384_s13 + $0x28] sm:$0xff] }
0x1215   :  { %3624 = vmatprep.subr.mxu1 %v3137_v18 }
0x1216   :  { %3625 = vmatpush3.msra.mxu1 %v3137_v18 }
0x1217   :  { %3627 = vmatmul.mubr.msk.f32.vlgmr.msra.gmra.mxu1 %vm448_vm3, %v3567_v44  ;;  %v3183_v44 = vld [vmem:[%s4384_s13 + $0x30] sm:$0xff]  ;;  %3640 = vmatprep.subr.mxu1 %v3196_v49 }
0x1218   :  { %3641 = vmatpush3.msra.mxu1 %v3196_v49 }
0x1219   :  { %3642 = vmatprep.subr.mxu1 %v3195_v50 }
0x121a   :  { %3643 = vmatpush3.msra.mxu1 %v3195_v50 }
0x121b   :  { %3644 = vmatprep.subr.mxu1 %v3194_v51 }
0x121c   :  { %3645 = vmatpush3.msra.mxu1 %v3194_v51  ;;  %v3204_v51 = vld [vmem:[%s4391_s18 + $0x1] ss:$0 sm:$0xff] }
0x121d   :  { %3646 = vmatprep.subr.mxu1 %v3193_v52 }
0x121e   :  { %3647 = vmatpush3.msra.mxu1 %v3193_v52 }
0x121f   :  { %3648 = vmatprep.subr.mxu1 %v3192_v7 }
0x1220   :  { %3649 = vmatpush3.msra.mxu1 %v3192_v7 }
0x1221   :  { %3650 = vmatprep.subr.mxu1 %v3191_v58 }
0x1222   :  { %3651 = vmatpush3.msra.mxu1 %v3191_v58 }
0x1223   :  { %3652 = vmatprep.subr.mxu1 %v3190_v8 }
0x1224   :  { %3653 = vmatpush3.msra.mxu1 %v3190_v8 }
0x1225   :  { %3654 = vmatprep.subr.mxu1 %v3189_v9 }
0x1226   :  { %3655 = vmatpush3.msra.mxu1 %v3189_v9 }
0x12d3   :  { %v3614_v20 = vpop.f32.mrf.mxu1 }
0x12d5   :  { %v2469_v21 = vpop.f32.mrf.mxu1 }
0x12d6   :  { %3619 = vmatprep.mubr.msk.f32.mxu0 %vm448_vm3, %v2469_v21 }
0x12d7   :  { %3620 = vmatmul.mubr.msk.f32.vlgmr.msra.gmra.mxu0 %vm448_vm3, %v3614_v20  ;;  %v3628_v22 = vpop.f32.mrf.mxu1 }
0x12d9   :  { %v2634_v26 = vpop.f32.mrf.mxu1 }
0x1397   :  { %v3621_v23 = vpop.f32.mrf.mxu0 }
0x1398   :  { %v2640_v25 = vadd.f32 %v3628_v22, %v3621_v23 }
0x1399   :  { %v2553_v29 = vpop.f32.mrf.mxu0 }
0x139a   :  { %v2652_v30 = vadd.f32 %v3176_v24, %v2640_v25  ;;  %v2635_v31 = vadd.f32 %v2634_v26, %v2553_v29 }
0x139c   :  { %v2651_v32 = vadd.f32 %v3176_v24, %v2635_v31  ;;  %v2654_v27 = vadd.f32 %v2652_v30, %v4142_v48 }
0x139e   :  { %v2662_v28 = vsel %vm90_vm0, %v2654_v27, 0.0  ;;  %v2653_v33 = vadd.f32 %v2651_v32, %v4140_v47  ;;  %v3184_v47 = vld [vmem:[%s4384_s13 + $0x38] sm:$0xff] }
0x139f   :  { %2663 = vadd.xlane.f32.xlu0 %v2662_v28  ;;  %3629 = vmatprep.subr.mxu0 %v3184_v47 }
0x13a0   :  { %v2659_v34 = vsel %vm90_vm0, %v2653_v33, 0.0  ;;  %3630 = vmatpush3.msra.mxu0 %v3184_v47 }
0x13a1   :  { %2660 = vadd.xlane.f32.xlu1 %v2659_v34  ;;  %3631 = vmatprep.subr.mxu0 %v3183_v44 }
0x13a2   :  { %3632 = vmatpush3.msra.mxu0 %v3183_v44  ;;  %v3203_v44 = vld [vmem:[%s4390_s17 + $0x1] ss:$0 sm:$0xff] }
0x13a3   :  { %3633 = vmatprep.subr.mxu0 %v3182_v45 }
0x13a4   :  { %3634 = vmatpush3.msra.mxu0 %v3182_v45 }
0x13a5   :  { %3635 = vmatprep.subr.mxu0 %v3181_v46 }
0x13a6   :  { %3636 = vmatpush3.msra.mxu0 %v3181_v46 }
0x1428   :  { %v2664_v35 = vpop.xlane.xlu0 %2663 }
0x1429   :  { %v2666_v36 = vmul.f32 0.03125, %v2664_v35  ;;  %v2946_v35 = vld [vmem:[%s4392_s19 + $0x18] sm:$0xff] }
0x142a   :  { %v2661_v37 = vpop.xlane.xlu1 %2660  ;;  %3659 = vmatprep.subr.mxu0 %v2946_v35 }
0x142b   :  { %v2668_v38 = vsub.f32 %v2654_v27, %v2666_v36  ;;  %v2665_v39 = vmul.f32 0.03125, %v2661_v37  ;;  %v2945_v36 = vld [vmem:[%s4392_s19 + $0x10] sm:$0xff]  ;;  %v2944_v37 = vld [vmem:[%s4392_s19 + $0x8] sm:$0xff] }
0x142d   :  { %v2667_v40 = vsub.f32 %v2653_v33, %v2665_v39  ;;  %v2670_v41 = vmul.f32 %v2668_v38, %v2668_v38 }
0x142f   :  { %v2674_v42 = vsel %vm90_vm0, %v2670_v41, 0.0  ;;  %v2669_v43 = vmul.f32 %v2667_v40, %v2667_v40 }
0x1430   :  { %2675 = vadd.xlane.f32.xlu0 %v2674_v42 }
0x1431   :  { %v2671_v48 = vsel %vm90_vm0, %v2669_v43, 0.0 }
0x1432   :  { %2672 = vadd.xlane.f32.xlu1 %v2671_v48 }
0x14b9   :  { %v2676_v53 = vpop.xlane.xlu0 %2675 }
0x14ba   :  { %v2678_v54 = vmul.f32 0.03125, %v2676_v53 }
0x14bb   :  { %v2673_v55 = vpop.xlane.xlu1 %2672 }
0x14bc   :  { %v2680_v56 = vadd.f32 1e-05, %v2678_v54  ;;  %v2677_v59 = vmul.f32 0.03125, %v2673_v55  ;;  %v3205_v55 = vld [vmem:[%s4393_s20] ss:$0 sm:$0xff] }
0x14be   :  { %3713 = vrsqrt.f32 %v2680_v56  ;;  %v2679_v60 = vadd.f32 1e-05, %v2677_v59 }
0x14c0   :  { %3715 = vrsqrt.f32 %v2679_v60 }
0x14cb   :  { %v3714_v61 = vpop.eup %3713 }
0x14cc   :  { %v2684_v63 = vmul.f32 %v3714_v61, %v2668_v38  ;;  %v2943_v38 = vld [vmem:[%s4392_s19] sm:$0xff] }
0x14cd   :  { %v3716_v0 = vpop.eup %3715 }
0x14ce   :  { %v2683_v1 = vmul.f32 %v3716_v0, %v2667_v40  ;;  %v2692_v2 = vmul.f32 %v3179_v62, %v2684_v63 }
0x14d0   :  { %v2691_v4 = vmul.f32 %v3179_v62, %v2683_v1  ;;  %v2700_v6 = vadd.f32 %v3180_v3, %v2692_v2 }
0x14d2   :  { %v2699_v5 = vadd.f32 %v3180_v3, %v2691_v4 }
0x14d4   :  { %3637 = vmatprep.mubr.msk.f32.mxu0 %vm90_vm0, %v2699_v5 }
0x14d5   :  { %3638 = vmatmul.mubr.msk.f32.vlgmr.msra.gmra.mxu0 %vm90_vm0, %v2700_v6 }
0x14d6   :  { %3660 = vmatpush3.msra.mxu0 %v2946_v35 }
0x14d7   :  { %3661 = vmatprep.subr.mxu0 %v2945_v36 }
0x14d8   :  { %3662 = vmatpush3.msra.mxu0 %v2945_v36 }
0x14d9   :  { %3663 = vmatprep.subr.mxu0 %v2944_v37 }
0x14da   :  { %3664 = vmatpush3.msra.mxu0 %v2944_v37 }
0x14db   :  { %3665 = vmatprep.subr.mxu0 %v2943_v38 }
0x14dc   :  { %3666 = vmatpush3.msra.mxu0 %v2943_v38 }
0x1595   :  { %v3639_v10 = vpop.f32.mrf.mxu0 }
0x1596   :  { %v2792_v11 = vadd.f32 %v3639_v10, %v3186_v57 }
0x1597   :  { %v2786_v12 = vpop.f32.mrf.mxu0 }
0x1598   :  { %v2787_v13 = vadd.f32 %v3186_v57, %v2786_v12  ;;  %v2796_v15 = vmax.f32 %v2792_v11, 0.0 }
0x159a   :  { %v2795_v14 = vmax.f32 %v2787_v13, 0.0 }
0x159c   :  { %3656 = vmatprep.mubr.msk.f32.mxu1 %vm1429_vm10, %v2795_v14 }
0x159d   :  { %3657 = vmatmul.mubr.msk.f32.vlgmr.msra.gmra.mxu1 %vm1429_vm10, %v2796_v15 }
0x165d   :  { %v3658_v17 = vpop.f32.mrf.mxu1 }
0x165e   :  { %v2892_v18 = vadd.f32 %v3658_v17, %v3198_v16 }
0x165f   :  { %v2886_v19 = vpop.f32.mrf.mxu1 }
0x1660   :  { %v2887_v20 = vadd.f32 %v3198_v16, %v2886_v19  ;;  %v2896_v21 = vadd.f32 %v2892_v18, %v2700_v6 }
0x1662   :  { %v2904_v22 = vsel %vm90_vm0, %v2896_v21, 0.0  ;;  %v2895_v23 = vadd.f32 %v2887_v20, %v2699_v5 }
0x1663   :  { %2905 = vadd.xlane.f32.xlu0 %v2904_v22 }
0x1664   :  { %v2901_v24 = vsel %vm90_vm0, %v2895_v23, 0.0 }
0x1665   :  { %2902 = vadd.xlane.f32.xlu1 %v2901_v24 }
0x16ec   :  { %v2906_v25 = vpop.xlane.xlu0 %2905 }
0x16ed   :  { %v2908_v26 = vmul.f32 0.03125, %v2906_v25 }
0x16ee   :  { %v2903_v29 = vpop.xlane.xlu1 %2902 }
0x16ef   :  { %v2910_v30 = vsub.f32 %v2896_v21, %v2908_v26  ;;  %v2907_v31 = vmul.f32 0.03125, %v2903_v29 }
0x16f1   :  { %v2909_v32 = vsub.f32 %v2895_v23, %v2907_v31  ;;  %v2912_v27 = vmul.f32 %v2910_v30, %v2910_v30 }
0x16f3   :  { %v2916_v28 = vsel %vm90_vm0, %v2912_v27, 0.0  ;;  %v2911_v33 = vmul.f32 %v2909_v32, %v2909_v32 }
0x16f4   :  { %2917 = vadd.xlane.f32.xlu0 %v2916_v28 }
0x16f5   :  { %v2913_v34 = vsel %vm90_vm0, %v2911_v33, 0.0 }
0x16f6   :  { %2914 = vadd.xlane.f32.xlu1 %v2913_v34 }
0x177d   :  { %v2918_v39 = vpop.xlane.xlu0 %2917 }
0x177e   :  { %v2920_v40 = vmul.f32 0.03125, %v2918_v39 }
0x177f   :  { %v2915_v41 = vpop.xlane.xlu1 %2914 }
0x1780   :  { %v2922_v42 = vadd.f32 1e-05, %v2920_v40  ;;  %v2919_v43 = vmul.f32 0.03125, %v2915_v41 }
0x1782   :  { %3717 = vrsqrt.f32 %v2922_v42  ;;  %v2921_v48 = vadd.f32 1e-05, %v2919_v43 }
0x1784   :  { %3719 = vrsqrt.f32 %v2921_v48 }
0x178f   :  { %v3718_v47 = vpop.eup %3717 }
0x1790   :  { %v2926_v45 = vmul.f32 %v3718_v47, %v2910_v30 }
0x1791   :  { %v3720_v46 = vpop.eup %3719 }
0x1792   :  { %v2925_v49 = vmul.f32 %v3720_v46, %v2909_v32  ;;  %v2934_v50 = vmul.f32 %v3203_v44, %v2926_v45 }
0x1794   :  { %v2933_v52 = vmul.f32 %v3203_v44, %v2925_v49  ;;  %v2942_v54 = vadd.f32 %v3204_v51, %v2934_v50 }
0x1796   :  { %v2941_v53 = vadd.f32 %v3204_v51, %v2933_v52 }
0x1798   :  { %3667 = vmatprep.mubr.msk.f32.mxu0 %vm90_vm0, %v2941_v53 }
0x1799   :  { %3668 = vmatmul.mubr.msk.f32.vlgmr.msra.gmra.mxu0 %vm90_vm0, %v2942_v54 }
0x1859   :  { %v3669_v56 = vpop.f32.mrf.mxu0 }
0x185a   :  { %v3032_v59 = vadd.f32 %v3669_v56, %v3205_v55 }
0x185b   :  { %v3026_v60 = vpop.f32.mrf.mxu0 }
0x185c   :  { %3036 = vst [vmem:[%s4394_s21 + $0x8] sm:$0xff] %v3032_v59  ;;  %v3027_v61 = vadd.f32 %v3205_v55, %v3026_v60 }
0x185e   :  { %3035 = vst [vmem:[%s4394_s21] sm:$0xff] %v3027_v61 }

</bundles_post_ra>
